<compile_context>
chip_gen: v6e
topology: v6e:2x2x1
jax: 0.10.0
libtpu: 0.0.40
codegen_flags: <defaults>
</compile_context>

<pallas_src>
import jax
import jax.numpy as jnp
import numpy as np
from jax.experimental import pallas as pl
from jax.experimental.pallas import tpu as pltpu

BN_EPS = 1e-5


# ------------------------------ Pallas kernel ------------------------------ #

def _dann_kernel(x_ref, band_ref, w1_ref, wbig_ref, w3_ref, bias_ref, out_ref,
                 colsum_ref):
    """Fused DANN forward: 3x3 conv (banded matmuls) -> ReLU -> GAP -> both heads.

    x:    [B, H+2, (W+2)*C]  f32   padded NHWC input, W and C flattened together
    band: [3, (W+2)*C, W*CF] bf16  band-structured conv weights (one slab per dh)
    w1:   [W*CF, H1+HD]      bf16  GAP + (BN-folded) first Linear of both heads
    wbig: [H1+HD, H2+HD]     bf16  [[w2, 0], [0, I]]: label 2nd Linear + domain pass
    w3:   [H2+HD, OUTW]      bf16  last Linear of both heads -> lane-dense slab
    bias: [8, BW]            f32   row0 conv (tiled per w), row1 b1, row2 b2, row3 b3
    out:  [B, OUTW]          f32   class logit at col 0, domain logit at col od
    colsum: [B, W*CF]        f32   scratch (per-sample column sums over h)
    """
    B = x_ref.shape[0]
    H = x_ref.shape[1] - 2
    WCF = band_ref.shape[2]
    H1A = w1_ref.shape[1]
    HCAT = wbig_ref.shape[1]
    OUTW = out_ref.shape[1]

    # --- 3x3 SAME conv as 3 banded matmuls per sample (im2col done in-kernel) -----
    for b in range(B):                       # tiny static batch, unrolled at trace
        acc = None
        for dh in range(3):
            xs = x_ref[b, dh:dh + H, :].astype(jnp.bfloat16)        # [H, (W+2)*C]
            part = jnp.dot(xs, band_ref[dh],
                           preferred_element_type=jnp.float32)      # [H, W*CF]
            acc = part if acc is None else acc + part
        act = jnp.maximum(acc + bias_ref[0:1, 0:WCF], 0.0)          # ReLU (f32)
        colsum_ref[b:b + 1, :] = jnp.sum(act, axis=0, keepdims=True)

    # The GAP's 1/(H*W) and the per-w reduction are folded into w1 at pack time, so
    # the per-sample column sums feed the fused first Linear of both heads directly.
    colsum = colsum_ref[...]                                        # [B, W*CF]
    h = jnp.dot(colsum.astype(jnp.bfloat16), w1_ref[...],
                preferred_element_type=jnp.float32)
    h = jnp.maximum(h + bias_ref[1:2, 0:H1A], 0.0)                  # [B, H1+HD]

    # Label second Linear + domain passthrough in one matmul; ReLU is a no-op on the
    # (already non-negative) domain columns because their bias is zero.
    hcat = jnp.dot(h.astype(jnp.bfloat16), wbig_ref[...],
                   preferred_element_type=jnp.float32)
    hcat = jnp.maximum(hcat + bias_ref[2:3, 0:HCAT], 0.0)           # [B, H2+HD]

    # Last Linear of both heads -> lane-dense output slab.
    out = jnp.dot(hcat.astype(jnp.bfloat16), w3_ref[...],
                  preferred_element_type=jnp.float32)
    out_ref[...] = out + bias_ref[3:4, 0:OUTW]


# ------------------------------- packing ------------------------------------ #

def _fold_bn(w, b, g, beta, m, v):
    """Fold inference BatchNorm into the preceding Linear: y = (xW+b-m)*s + beta."""
    s = g * jax.lax.rsqrt(v + BN_EPS)            # [1, C]
    return w * s, (b - m) * s + beta


def pack_params(params, output_dim=1, height=16, width=16):
    """One-time packing: fold BN + GAP into weights, build banded conv slabs (bf16)."""
    H, W = height, width
    Wp = W + 2
    conv_w = np.asarray(params["conv_w"], np.float32)      # [9*C, CF], rows (dh,dw,c)
    K9C, CF = conv_w.shape
    C = K9C // 9
    cw = conv_w.reshape(3, 3, C, CF)

    # Band-structured conv weights: band[dh, (w+dw)*C + c, w*CF + f] = cw[dh, dw, c, f]
    band = np.zeros((3, Wp * C, W * CF), np.float32)
    for dh in range(3):
        for dw in range(3):
            for w in range(W):
                band[dh, (w + dw) * C:(w + dw + 1) * C, w * CF:(w + 1) * CF] = cw[dh, dw]

    # First Linear of both heads (BN folded), then fold the global-average-pool:
    # feat = (1/HW) * sum_w colsum[:, w*CF:(w+1)*CF]   =>   w1p = tile(w1, W) / HW.
    w1l, b1l = _fold_bn(params["lw1"], params["lb1"], params["lg1"],
                        params["lbe1"], params["lm1"], params["lv1"])
    w1d, b1d = _fold_bn(params["dw1"], params["db1"], params["dg1"],
                        params["dbe1"], params["dm1"], params["dv1"])
    w1 = jnp.concatenate([w1l, w1d], axis=1)                # [CF, H1+HD]
    b1 = jnp.concatenate([b1l, b1d], axis=1)                # [1, H1+HD]
    w1p = jnp.tile(w1, (W, 1)) / float(H * W)               # [W*CF, H1+HD]

    w2, b2 = _fold_bn(params["lw2"], params["lb2"], params["lg2"],
                      params["lbe2"], params["lm2"], params["lv2"])   # [H1, H2]

    H1 = params["lw1"].shape[1]
    HD = params["dw1"].shape[1]
    H2 = params["lw2"].shape[1]
    od = output_dim
    OUTW = max(128, ((2 * od + 127) // 128) * 128)          # lane-dense output width
    HCAT = H2 + HD

    # Fused second stage: one matmul produces [h2 | hd] (identity passthrough for the
    # domain branch; legal because hd >= 0 and its bias is zero, so the subsequent
    # ReLU is a no-op on those columns).
    wbig = jnp.zeros((H1 + HD, HCAT), jnp.float32)
    wbig = wbig.at[0:H1, 0:H2].set(w2)
    wbig = wbig.at[H1:H1 + HD, H2:H2 + HD].set(jnp.eye(HD, dtype=jnp.float32))

    # Last Linear of both heads -> lane-dense slab (class col 0, domain col od).
    w3 = jnp.zeros((HCAT, OUTW), jnp.float32)
    w3 = w3.at[0:H2, 0:od].set(params["lw3"])
    w3 = w3.at[H2:H2 + HD, od:2 * od].set(params["dw2"])

    # Single bias slab (one DMA instead of many scalar-sized ones), kept in f32.
    BW = max(W * CF, H1 + HD, HCAT, OUTW)
    biases = jnp.zeros((8, BW), jnp.float32)
    biases = biases.at[0, 0:W * CF].set(jnp.tile(params["conv_b"][0], W))
    biases = biases.at[1, 0:H1 + HD].set(b1[0])
    biases = biases.at[2, 0:H2].set(b2[0])
    biases = biases.at[3, 0:od].set(params["lb3"][0])
    biases = biases.at[3, od:2 * od].set(params["db2"][0])

    return {"band": jnp.asarray(band, jnp.bfloat16),
            "w1p": w1p.astype(jnp.bfloat16),
            "wbig": wbig.astype(jnp.bfloat16),
            "w3": w3.astype(jnp.bfloat16),
            "biases": biases}


# ------------------------------- JAX glue ------------------------------------ #

def dann_forward(packed, x, alpha):
    """Fused DANN forward.  Returns the lane-dense [B, 128] logit slab (class logit
    at column 0, domain logit at column output_dim).  `alpha` is unused in the
    forward pass: ReverseLayerF only acts on gradients."""
    del alpha
    x = x.astype(jnp.float32)
    B, C, H, W = x.shape
    # Minimal wrapper prep (one transpose + pad + reshape); im2col itself is in-kernel.
    x_nhwc = jnp.transpose(x, (0, 2, 3, 1))
    xp = jnp.pad(x_nhwc, ((0, 0), (1, 1), (1, 1), (0, 0)))
    x3 = xp.reshape(B, H + 2, (W + 2) * C)

    band, w1p, wbig, w3, biases = (packed["band"], packed["w1p"], packed["wbig"],
                                   packed["w3"], packed["biases"])
    WCF = band.shape[2]
    H1A = w1p.shape[1]
    HCAT = wbig.shape[1]
    OUTW = w3.shape[1]

    flops = 2 * B * (3 * H * ((W + 2) * C) * WCF    # banded conv matmuls
                     + WCF * H1A                    # fused GAP + first Linears
                     + H1A * HCAT                   # fused second stage
                     + HCAT * OUTW)                 # fused last Linears
    bytes_accessed = sum(int(a.size) * a.dtype.itemsize
                         for a in (x3, band, w1p, wbig, w3, biases)) + B * OUTW * 4

    return pl.pallas_call(
        _dann_kernel,
        out_shape=jax.ShapeDtypeStruct((B, OUTW), jnp.float32),
        in_specs=[pl.BlockSpec(memory_space=pltpu.MemorySpace.VMEM)] * 6,
        out_specs=pl.BlockSpec(memory_space=pltpu.MemorySpace.VMEM),
        scratch_shapes=[pltpu.VMEM((B, WCF), jnp.float32)],
        cost_estimate=pl.CostEstimate(flops=flops, transcendentals=0,
                                      bytes_accessed=bytes_accessed),
    )(x3, band, w1p, wbig, w3, biases)


# ---------------------- unfolded pure-JAX reference ------------------------- #

def _reference_forward(params, x, alpha):
    """Unfolded, full-f32 reference used to validate the packed/fused kernel."""
    del alpha
    hp = jax.lax.Precision.HIGHEST
    x_nhwc = jnp.transpose(x, (0, 2, 3, 1)).astype(jnp.float32)
    C = x_nhwc.shape[-1]
    CF = params["conv_w"].shape[1]
    w_hwio = params["conv_w"].reshape(3, 3, C, CF)          # conv_w rows are (dh, dw, c)
    pre = jax.lax.conv_general_dilated(
        x_nhwc, w_hwio, (1, 1), "SAME",
        dimension_numbers=("NHWC", "HWIO", "NHWC"), precision=hp)
    pre = pre + params["conv_b"].reshape(1, 1, 1, CF)
    feat = jnp.mean(jnp.maximum(pre, 0.0), axis=(1, 2))     # [B, CF]

    def bn(h, g, be, m, v):
        return (h - m) * jax.lax.rsqrt(v + BN_EPS) * g + be

    dot = lambda a, b: jnp.dot(a, b, precision=hp)
    h = jnp.maximum(bn(dot(feat, params["lw1"]) + params["lb1"],
                       params["lg1"], params["lbe1"], params["lm1"], params["lv1"]), 0.0)
    h = jnp.maximum(bn(dot(h, params["lw2"]) + params["lb2"],
                       params["lg2"], params["lbe2"], params["lm2"], params["lv2"]), 0.0)
    class_logit = dot(h, params["lw3"]) + params["lb3"]
    d = jnp.maximum(bn(dot(feat, params["dw1"]) + params["db1"],
                       params["dg1"], params["dbe1"], params["dm1"], params["dv1"]), 0.0)
    domain_logit = dot(d, params["dw2"]) + params["db2"]
    return class_logit, domain_logit


def init_params(key, in_channels=4, feat_dim=32, output_dim=1):
    ks = jax.random.split(key, 12)

    def lin(k, fan_in, fan_out):
        s = 1.0 / jnp.sqrt(fan_in)
        kw, kb = jax.random.split(k)
        w = jax.random.uniform(kw, (fan_in, fan_out), jnp.float32, -s, s)
        b = jax.random.uniform(kb, (1, fan_out), jnp.float32, -s, s)
        return w, b

    def bn_stats(k, c):
        g = jnp.ones((1, c), jnp.float32)
        be = jnp.zeros((1, c), jnp.float32)
        m = 0.1 * jax.random.normal(k, (1, c), jnp.float32)
        v = jnp.abs(jax.random.normal(jax.random.fold_in(k, 1), (1, c), jnp.float32)) + 0.5
        return g, be, m, v

    p = {}
    p["conv_w"], p["conv_b"] = lin(ks[0], 9 * in_channels, feat_dim)

    # label classifier: Linear -> BN -> Dropout2d -> ReLU -> Linear -> BN -> ReLU -> Linear
    p["lw1"], p["lb1"] = lin(ks[1], feat_dim, 128)
    p["lg1"], p["lbe1"], p["lm1"], p["lv1"] = bn_stats(ks[2], 128)
    p["lw2"], p["lb2"] = lin(ks[3], 128, 64)
    p["lg2"], p["lbe2"], p["lm2"], p["lv2"] = bn_stats(ks[4], 64)
    p["lw3"], p["lb3"] = lin(ks[5], 64, output_dim)

    # domain classifier: Linear -> BN -> ReLU -> Linear
    p["dw1"], p["db1"] = lin(ks[6], feat_dim, 128)
    p["dg1"], p["dbe1"], p["dm1"], p["dv1"] = bn_stats(ks[7], 128)
    p["dw2"], p["db2"] = lin(ks[8], 128, output_dim)
    return p


if __name__ == "__main__":
    key = jax.random.PRNGKey(0)
    x = jax.random.normal(key, (2, 4, 16, 16), dtype=jnp.float32)  # NCHW like PyTorch
    alpha = 0.3
    output_dim = 1

    params = init_params(jax.random.PRNGKey(42), in_channels=4, feat_dim=32,
                         output_dim=output_dim)
    packed = pack_params(params, output_dim=output_dim, height=16, width=16)

    fwd = jax.jit(dann_forward)
    slab = fwd(packed, x, alpha)                 # [B, 128] lane-dense logit slab
    jax.block_until_ready(slab)

    # Split at the caller (outside the jit) -> no post-kernel HLOs inside the jit.
    class_logit = slab[:, 0:output_dim]
    domain_logit = slab[:, output_dim:2 * output_dim]

    ref_class, ref_domain = _reference_forward(params, x, alpha)

    assert class_logit.shape == (2, 1) and domain_logit.shape == (2, 1)
    assert bool(jnp.all(jnp.isfinite(class_logit))) and bool(jnp.all(jnp.isfinite(domain_logit)))
    # bf16 MXU operands + f32 accumulation vs. a full-f32 reference: agreement ~1e-3.
    assert bool(jnp.allclose(class_logit, ref_class, atol=2e-2, rtol=2e-2))
    assert bool(jnp.allclose(domain_logit, ref_domain, atol=2e-2, rtol=2e-2))
    print("KERNEL_OK")
</pallas_src>

<mosaic_0001>
module attributes {stable_mosaic.version = 11 : i64} {
  func.func @_dann_kernel(%arg0: memref<2x18x72xf32, #tpu.memory_space<vmem>>, %arg1: memref<3x72x512xbf16, #tpu.memory_space<vmem>>, %arg2: memref<512x256xbf16, #tpu.memory_space<vmem>>, %arg3: memref<256x192xbf16, #tpu.memory_space<vmem>>, %arg4: memref<192x128xbf16, #tpu.memory_space<vmem>>, %arg5: memref<8x512xf32, #tpu.memory_space<vmem>>, %arg6: memref<2x128xf32, #tpu.memory_space<vmem>>, %arg7: memref<2x512xf32, #tpu.memory_space<vmem>>) attributes {dimension_semantics = [], scalar_prefetch = 0 : i64, scratch_operands = 1 : i64, tpu.core_type = #tpu.core_type<tc>} {
    %c0 = arith.constant 0 : index
    %c0_0 = arith.constant 0 : index
    %c0_1 = arith.constant 0 : index
    %0 = vector.load %arg0[%c0, %c0_0, %c0_1] : memref<2x18x72xf32, #tpu.memory_space<vmem>>, vector<1x16x72xf32>
    %1 = vector.shape_cast %0 : vector<1x16x72xf32> to vector<16x72xf32>
    %2 = arith.truncf %1 : vector<16x72xf32> to vector<16x72xbf16>
    %c0_2 = arith.constant 0 : index
    %c0_3 = arith.constant 0 : index
    %c0_4 = arith.constant 0 : index
    %3 = vector.load %arg1[%c0_2, %c0_3, %c0_4] : memref<3x72x512xbf16, #tpu.memory_space<vmem>>, vector<1x72x512xbf16>
    %4 = vector.shape_cast %3 : vector<1x72x512xbf16> to vector<72x512xbf16>
    %cst = arith.constant dense<0.000000e+00> : vector<16x512xf32>
    %5 = tpu.matmul %2, %4, %cst {dimension_numbers = #tpu.dot_dimension_numbers<[1], [0], [0], [1], [0, 0, 1, 1], [], []>} : vector<16x72xbf16>, vector<72x512xbf16>, vector<16x512xf32> -> vector<16x512xf32>
    %c0_5 = arith.constant 0 : index
    %c1 = arith.constant 1 : index
    %c0_6 = arith.constant 0 : index
    %6 = vector.load %arg0[%c0_5, %c1, %c0_6] : memref<2x18x72xf32, #tpu.memory_space<vmem>>, vector<1x16x72xf32>
    %7 = vector.shape_cast %6 : vector<1x16x72xf32> to vector<16x72xf32>
    %8 = arith.truncf %7 : vector<16x72xf32> to vector<16x72xbf16>
    %c1_7 = arith.constant 1 : index
    %c0_8 = arith.constant 0 : index
    %c0_9 = arith.constant 0 : index
    %9 = vector.load %arg1[%c1_7, %c0_8, %c0_9] : memref<3x72x512xbf16, #tpu.memory_space<vmem>>, vector<1x72x512xbf16>
    %10 = vector.shape_cast %9 : vector<1x72x512xbf16> to vector<72x512xbf16>
    %cst_10 = arith.constant dense<0.000000e+00> : vector<16x512xf32>
    %11 = tpu.matmul %8, %10, %cst_10 {dimension_numbers = #tpu.dot_dimension_numbers<[1], [0], [0], [1], [0, 0, 1, 1], [], []>} : vector<16x72xbf16>, vector<72x512xbf16>, vector<16x512xf32> -> vector<16x512xf32>
    %12 = arith.addf %5, %11 : vector<16x512xf32>
    %c0_11 = arith.constant 0 : index
    %c2 = arith.constant 2 : index
    %c0_12 = arith.constant 0 : index
    %13 = vector.load %arg0[%c0_11, %c2, %c0_12] : memref<2x18x72xf32, #tpu.memory_space<vmem>>, vector<1x16x72xf32>
    %14 = vector.shape_cast %13 : vector<1x16x72xf32> to vector<16x72xf32>
    %15 = arith.truncf %14 : vector<16x72xf32> to vector<16x72xbf16>
    %c2_13 = arith.constant 2 : index
    %c0_14 = arith.constant 0 : index
    %c0_15 = arith.constant 0 : index
    %16 = vector.load %arg1[%c2_13, %c0_14, %c0_15] : memref<3x72x512xbf16, #tpu.memory_space<vmem>>, vector<1x72x512xbf16>
    %17 = vector.shape_cast %16 : vector<1x72x512xbf16> to vector<72x512xbf16>
    %cst_16 = arith.constant dense<0.000000e+00> : vector<16x512xf32>
    %18 = tpu.matmul %15, %17, %cst_16 {dimension_numbers = #tpu.dot_dimension_numbers<[1], [0], [0], [1], [0, 0, 1, 1], [], []>} : vector<16x72xbf16>, vector<72x512xbf16>, vector<16x512xf32> -> vector<16x512xf32>
    %19 = arith.addf %12, %18 : vector<16x512xf32>
    %c0_17 = arith.constant 0 : index
    %c0_18 = arith.constant 0 : index
    %20 = vector.load %arg5[%c0_17, %c0_18] : memref<8x512xf32, #tpu.memory_space<vmem>>, vector<1x512xf32>
    %21 = vector.broadcast %20 : vector<1x512xf32> to vector<16x512xf32>
    %22 = arith.addf %19, %21 : vector<16x512xf32>
    %cst_19 = arith.constant 0.000000e+00 : f32
    %23 = vector.broadcast %cst_19 : f32 to vector<16x512xf32>
    %24 = arith.maximumf %22, %23 : vector<16x512xf32>
    %cst_20 = arith.constant dense<0.000000e+00> : vector<512xf32>
    %25 = vector.multi_reduction <add>, %24, %cst_20 [0] : vector<16x512xf32> to vector<512xf32>
    %26 = vector.shape_cast %25 : vector<512xf32> to vector<1x512xf32>
    %c0_21 = arith.constant 0 : index
    %c0_22 = arith.constant 0 : index
    %27 = vector.load %arg7[%c0_21, %c0_22] : memref<2x512xf32, #tpu.memory_space<vmem>>, vector<1x512xf32>
    tpu.vector_store %arg7[%c0_21, %c0_22], %26 {strides = array<i32>} : memref<2x512xf32, #tpu.memory_space<vmem>>, vector<1x512xf32>,
    %c1_23 = arith.constant 1 : index
    %c0_24 = arith.constant 0 : index
    %c0_25 = arith.constant 0 : index
    %28 = vector.load %arg0[%c1_23, %c0_24, %c0_25] : memref<2x18x72xf32, #tpu.memory_space<vmem>>, vector<1x16x72xf32>
    %29 = vector.shape_cast %28 : vector<1x16x72xf32> to vector<16x72xf32>
    %30 = arith.truncf %29 : vector<16x72xf32> to vector<16x72xbf16>
    %c0_26 = arith.constant 0 : index
    %c0_27 = arith.constant 0 : index
    %c0_28 = arith.constant 0 : index
    %31 = vector.load %arg1[%c0_26, %c0_27, %c0_28] : memref<3x72x512xbf16, #tpu.memory_space<vmem>>, vector<1x72x512xbf16>
    %32 = vector.shape_cast %31 : vector<1x72x512xbf16> to vector<72x512xbf16>
    %cst_29 = arith.constant dense<0.000000e+00> : vector<16x512xf32>
    %33 = tpu.matmul %30, %32, %cst_29 {dimension_numbers = #tpu.dot_dimension_numbers<[1], [0], [0], [1], [0, 0, 1, 1], [], []>} : vector<16x72xbf16>, vector<72x512xbf16>, vector<16x512xf32> -> vector<16x512xf32>
    %c1_30 = arith.constant 1 : index
    %c1_31 = arith.constant 1 : index
    %c0_32 = arith.constant 0 : index
    %34 = vector.load %arg0[%c1_30, %c1_31, %c0_32] : memref<2x18x72xf32, #tpu.memory_space<vmem>>, vector<1x16x72xf32>
    %35 = vector.shape_cast %34 : vector<1x16x72xf32> to vector<16x72xf32>
    %36 = arith.truncf %35 : vector<16x72xf32> to vector<16x72xbf16>
    %c1_33 = arith.constant 1 : index
    %c0_34 = arith.constant 0 : index
    %c0_35 = arith.constant 0 : index
    %37 = vector.load %arg1[%c1_33, %c0_34, %c0_35] : memref<3x72x512xbf16, #tpu.memory_space<vmem>>, vector<1x72x512xbf16>
    %38 = vector.shape_cast %37 : vector<1x72x512xbf16> to vector<72x512xbf16>
    %cst_36 = arith.constant dense<0.000000e+00> : vector<16x512xf32>
    %39 = tpu.matmul %36, %38, %cst_36 {dimension_numbers = #tpu.dot_dimension_numbers<[1], [0], [0], [1], [0, 0, 1, 1], [], []>} : vector<16x72xbf16>, vector<72x512xbf16>, vector<16x512xf32> -> vector<16x512xf32>
    %40 = arith.addf %33, %39 : vector<16x512xf32>
    %c1_37 = arith.constant 1 : index
    %c2_38 = arith.constant 2 : index
    %c0_39 = arith.constant 0 : index
    %41 = vector.load %arg0[%c1_37, %c2_38, %c0_39] : memref<2x18x72xf32, #tpu.memory_space<vmem>>, vector<1x16x72xf32>
    %42 = vector.shape_cast %41 : vector<1x16x72xf32> to vector<16x72xf32>
    %43 = arith.truncf %42 : vector<16x72xf32> to vector<16x72xbf16>
    %c2_40 = arith.constant 2 : index
    %c0_41 = arith.constant 0 : index
    %c0_42 = arith.constant 0 : index
    %44 = vector.load %arg1[%c2_40, %c0_41, %c0_42] : memref<3x72x512xbf16, #tpu.memory_space<vmem>>, vector<1x72x512xbf16>
    %45 = vector.shape_cast %44 : vector<1x72x512xbf16> to vector<72x512xbf16>
    %cst_43 = arith.constant dense<0.000000e+00> : vector<16x512xf32>
    %46 = tpu.matmul %43, %45, %cst_43 {dimension_numbers = #tpu.dot_dimension_numbers<[1], [0], [0], [1], [0, 0, 1, 1], [], []>} : vector<16x72xbf16>, vector<72x512xbf16>, vector<16x512xf32> -> vector<16x512xf32>
    %47 = arith.addf %40, %46 : vector<16x512xf32>
    %c0_44 = arith.constant 0 : index
    %c0_45 = arith.constant 0 : index
    %48 = vector.load %arg5[%c0_44, %c0_45] : memref<8x512xf32, #tpu.memory_space<vmem>>, vector<1x512xf32>
    %49 = vector.broadcast %48 : vector<1x512xf32> to vector<16x512xf32>
    %50 = arith.addf %47, %49 : vector<16x512xf32>
    %cst_46 = arith.constant 0.000000e+00 : f32
    %51 = vector.broadcast %cst_46 : f32 to vector<16x512xf32>
    %52 = arith.maximumf %50, %51 : vector<16x512xf32>
    %cst_47 = arith.constant dense<0.000000e+00> : vector<512xf32>
    %53 = vector.multi_reduction <add>, %52, %cst_47 [0] : vector<16x512xf32> to vector<512xf32>
    %54 = vector.shape_cast %53 : vector<512xf32> to vector<1x512xf32>
    %c1_48 = arith.constant 1 : index
    %c0_49 = arith.constant 0 : index
    %55 = vector.load %arg7[%c1_48, %c0_49] : memref<2x512xf32, #tpu.memory_space<vmem>>, vector<1x512xf32>
    tpu.vector_store %arg7[%c1_48, %c0_49], %54 {strides = array<i32>} : memref<2x512xf32, #tpu.memory_space<vmem>>, vector<1x512xf32>,
    %c0_50 = arith.constant 0 : index
    %c0_51 = arith.constant 0 : index
    %56 = vector.load %arg7[%c0_50, %c0_51] : memref<2x512xf32, #tpu.memory_space<vmem>>, vector<2x512xf32>
    %57 = arith.truncf %56 : vector<2x512xf32> to vector<2x512xbf16>
    %c0_52 = arith.constant 0 : index
    %c0_53 = arith.constant 0 : index
    %58 = vector.load %arg2[%c0_52, %c0_53] : memref<512x256xbf16, #tpu.memory_space<vmem>>, vector<512x256xbf16>
    %cst_54 = arith.constant dense<0.000000e+00> : vector<2x256xf32>
    %59 = tpu.matmul %57, %58, %cst_54 {dimension_numbers = #tpu.dot_dimension_numbers<[1], [0], [0], [1], [0, 0, 1, 1], [], []>} : vector<2x512xbf16>, vector<512x256xbf16>, vector<2x256xf32> -> vector<2x256xf32>
    %c1_55 = arith.constant 1 : index
    %c0_56 = arith.constant 0 : index
    %60 = vector.load %arg5[%c1_55, %c0_56] : memref<8x512xf32, #tpu.memory_space<vmem>>, vector<1x256xf32>
    %61 = vector.broadcast %60 : vector<1x256xf32> to vector<2x256xf32>
    %62 = arith.addf %59, %61 : vector<2x256xf32>
    %cst_57 = arith.constant 0.000000e+00 : f32
    %63 = vector.broadcast %cst_57 : f32 to vector<2x256xf32>
    %64 = arith.maximumf %62, %63 : vector<2x256xf32>
    %65 = arith.truncf %64 : vector<2x256xf32> to vector<2x256xbf16>
    %c0_58 = arith.constant 0 : index
    %c0_59 = arith.constant 0 : index
    %66 = vector.load %arg3[%c0_58, %c0_59] : memref<256x192xbf16, #tpu.memory_space<vmem>>, vector<256x192xbf16>
    %cst_60 = arith.constant dense<0.000000e+00> : vector<2x192xf32>
    %67 = tpu.matmul %65, %66, %cst_60 {dimension_numbers = #tpu.dot_dimension_numbers<[1], [0], [0], [1], [0, 0, 1, 1], [], []>} : vector<2x256xbf16>, vector<256x192xbf16>, vector<2x192xf32> -> vector<2x192xf32>
    %c2_61 = arith.constant 2 : index
    %c0_62 = arith.constant 0 : index
    %68 = vector.load %arg5[%c2_61, %c0_62] : memref<8x512xf32, #tpu.memory_space<vmem>>, vector<1x192xf32>
    %69 = vector.broadcast %68 : vector<1x192xf32> to vector<2x192xf32>
    %70 = arith.addf %67, %69 : vector<2x192xf32>
    %cst_63 = arith.constant 0.000000e+00 : f32
    %71 = vector.broadcast %cst_63 : f32 to vector<2x192xf32>
    %72 = arith.maximumf %70, %71 : vector<2x192xf32>
    %73 = arith.truncf %72 : vector<2x192xf32> to vector<2x192xbf16>
    %c0_64 = arith.constant 0 : index
    %c0_65 = arith.constant 0 : index
    %74 = vector.load %arg4[%c0_64, %c0_65] : memref<192x128xbf16, #tpu.memory_space<vmem>>, vector<192x128xbf16>
    %cst_66 = arith.constant dense<0.000000e+00> : vector<2x128xf32>
    %75 = tpu.matmul %73, %74, %cst_66 {dimension_numbers = #tpu.dot_dimension_numbers<[1], [0], [0], [1], [0, 0, 1, 1], [], []>} : vector<2x192xbf16>, vector<192x128xbf16>, vector<2x128xf32> -> vector<2x128xf32>
    %c3 = arith.constant 3 : index
    %c0_67 = arith.constant 0 : index
    %76 = vector.load %arg5[%c3, %c0_67] : memref<8x512xf32, #tpu.memory_space<vmem>>, vector<1x128xf32>
    %77 = vector.broadcast %76 : vector<1x128xf32> to vector<2x128xf32>
    %78 = arith.addf %75, %77 : vector<2x128xf32>
    %c0_68 = arith.constant 0 : index
    %c0_69 = arith.constant 0 : index
    %79 = vector.load %arg6[%c0_68, %c0_69] : memref<2x128xf32, #tpu.memory_space<vmem>>, vector<2x128xf32>
    tpu.vector_store %arg6[%c0_68, %c0_69], %78 {strides = array<i32>} : memref<2x128xf32, #tpu.memory_space<vmem>>, vector<2x128xf32>,
    return
  }
}

</mosaic_0001>

<bundles_post_ra>
// kernel: dann_forward.1
= control target key start
LH: loop header
LB: loop body
LE: loop exit
PB: predicated region body
PF: predicated region fallthrough
CT: control target
= control target key end

     0   :  { %11 = vsyncpa [#allocation4], 0  ;;  %s3960_s0 = inlined_call_operand.vmem [shape: f32[2,18,72], index: 0, kind: input, shape index: {}]   ;;  %s3961_s1 = inlined_call_operand.vmem [shape: bf16[3,72,512], index: 1, kind: input, shape index: {}]   ;;  %s3962_s2 = inlined_call_operand.vmem [shape: bf16[512,256], index: 2, kind: input, shape index: {}]   ;;  %s3963_s3 = inlined_call_operand.vmem [shape: bf16[256,192], index: 3, kind: input, shape index: {}]   ;;  %s3964_s4 = inlined_call_operand.hbm [shape: bf16[192,128], index: 4, kind: input, shape index: {}]   ;;  %s3965_s5 = inlined_call_operand.vmem [shape: f32[8,512], index: 5, kind: input, shape index: {}]   ;;  %s3966_s6 = inlined_call_operand.hbm [shape: f32[2,128], index: 6, kind: output, shape index: {}]  }
   0x1   :  { %12 = vsyncpa [#allocation5], 0  ;;  %s3071_s21 = smov [#allocation3]  }
   0x2   :  { %s26_s22 = sshll.u32 %s3071_s21, 4  ;;  %s27_s22 = int_to_ptr.vmem [resolvable:$true] %s26_s22 }
   0x3   :  { %s3035_s23 = scalar_lea.vmem %s27_s22, 1536  ;;  %p3040_p1 = scmp.lt.s32.totalorder %s27_s22, %s27_s22 }
   0x4   :  { %p3036_p0 = scmp.ne.s32.totalorder %s27_s22, %s3035_s23  ;;  %p3041_p2 = scmp.lt.s32.totalorder %s3035_s23, %s3035_s23 }
   0x6   :  { %p3042_p3 = por %p3041_p2, %p3040_p1 }
   0x8   :  { %p3043_p4 = pnand %p3042_p3, %p3036_p0 }
   0xa   :  { %3046 = shalt.err (!%p3043_p4)
}
   0xb   :  { %s3072_s24 = smov 64   ;;  %s3073_s25 = smov 4  }
   0xc   :  { %32 = dma.hbm_to_vmem [thread:$0]  %s3964_s4, 1536, %s27_s22, [#allocation4], %s3072_s24, %s3072_s24, %s3073_s25  }
   0xd   :  { %3067 = dma.done.wait [#allocation4], 1536  }
   0xe   :  { %3068 = vsyncadd [#allocation4], 4294965760  ;;  %v3074_v0 = vmov 0   ;;  %v2462_v1 = vld [vmem:[%s3961_s1 + $0x110] sm:$0xff]  ;;  %vm176_vm0 = vcmask 1043456   ;;  %v2463_v2 = vld [vmem:[%s3961_s1 + $0x118] sm:$0xff] }
   0xf   :  { %221 = vmatprep.mubr.bf16.mxu0 %v3074_v0  ;;  %264 = vmatprep.mubr.bf16.mxu1 %v3074_v0  ;;  %v3124_v3 = vcombine.high %v2462_v1, %v2462_v1  ;;  %v3126_v4 = vcombine.high %v2463_v2, %v2463_v2  ;;  %v2480_v5 = vcombine.low %v2462_v1, %v2462_v1  ;;  %v3131_v7 = vld [vmem:[%s3961_s1 + $0xf4] ss:$16 sps:$4 sm:$0xff]   ;;  %v3136_v8 = vld [vmem:[%s3961_s1 + $0xfc] ss:$16 sps:$4 sm:$0xff]   ;;  %v3151_v11 = vld [vmem:[%s3961_s1 + $0xf0] ss:$16 sps:$4 sm:$0xff]  }
  0x10   :  { %v2482_v6 = vcombine.low %v2463_v2, %v2463_v2  ;;  %v3158_v12 = vld [vmem:[%s3961_s1 + $0xf8] ss:$16 sps:$4 sm:$0xff]   ;;  %v3165_v13 = vld [vmem:[%s3961_s1 + $0xd4] ss:$16 sps:$4 sm:$0xff]   ;;  %v3170_v14 = vld [vmem:[%s3961_s1 + $0xdc] ss:$16 sps:$4 sm:$0xff]  }
  0x11   :  { %2484 = vmatprep.subr.msk.bf16.mxu0 %vm176_vm0, %v3124_v3  ;;  %2486 = vmatprep.subr.msk.bf16.mxu1 %vm176_vm0, %v3126_v4  ;;  %v3143_v9 = vsel %vm176_vm0, %v2480_v5, 0  ;;  %v3175_v15 = vld [vmem:[%s3961_s1 + $0xd0] ss:$16 sps:$4 sm:$0xff]   ;;  %v3182_v16 = vld [vmem:[%s3961_s1 + $0xd8] ss:$16 sps:$4 sm:$0xff]   ;;  %vm172_vm1 = vcmask 588800  }
  0x12   :  { %v3146_v10 = vsel %vm176_vm0, %v2482_v6, 0  ;;  %196 = vmatpush1.bf16.msra.mxu0 %v3143_v9  ;;  %v3187_v17 = vld [vmem:[%s3961_s1 + $0xb4] ss:$16 sps:$4 sm:$0xff]   ;;  %v3194_v18 = vld [vmem:[%s3961_s1 + $0xbc] ss:$16 sps:$4 sm:$0xff]   ;;  %vm2386_vm3 = vcmask 523264  }
  0x13   :  { %239 = vmatpush1.bf16.msra.mxu1 %v3146_v10  ;;  %197 = vmatprep.subr.bf16.mxu0 %v3131_v7  ;;  %v3199_v19 = vld [vmem:[%s3961_s1 + $0xb0] ss:$16 sps:$4 sm:$0xff]   ;;  %v3206_v20 = vld [vmem:[%s3961_s1 + $0xb8] ss:$16 sps:$4 sm:$0xff]   ;;  %v3211_v21 = vld [vmem:[%s3961_s1 + $0x94] ss:$16 sps:$4 sm:$0xff]  }
  0x14   :  { %240 = vmatprep.subr.bf16.mxu1 %v3136_v8  ;;  %v3218_v22 = vld [vmem:[%s3961_s1 + $0x9c] ss:$16 sps:$4 sm:$0xff]   ;;  %v58_v23 = vld [vmem:[%s3961_s1 + $0x80] sm:$0xff]  ;;  %v3234_v26 = vld [vmem:[%s3961_s1 + $0x98] ss:$16 sps:$4 sm:$0xff]   ;;  %s3077_s17 = smov [#allocation6]  }
  0x15   :  { %v3226_v24 = vld [vmem:[%s3961_s1 + $0x90] ss:$16 sps:$4 sm:$0xff]   ;;  %v59_v25 = vld [vmem:[%s3961_s1 + $0x88] sm:$0xff]  ;;  %v3244_v29 = vcombine.high %v58_v23, %v58_v23  ;;  %v2504_v31 = vcombine.low %v58_v23, %v58_v23  ;;  %v3255_v34 = vld [vmem:[%s3961_s1 + $0x64] ss:$16 sps:$4 sm:$0xff]   ;;  %s2437_s18 = sshll.u32 %s3077_s17, 4  ;;  %s2438_s18 = int_to_ptr.vmem [resolvable:$true] %s2437_s18 }
  0x16   :  { %198 = vmatpush1.bf16.msra.mxu0 %v3151_v11  ;;  %v60_v27 = vld [vmem:[%s3960_s0 + $0x1] sm:$0xff]  ;;  %v61_v28 = vld [vmem:[%s3960_s0 + $0x9] sm:$0xff]  ;;  %v3248_v30 = vcombine.high %v59_v25, %v59_v25  ;;  %v2506_v32 = vcombine.low %v59_v25, %v59_v25  ;;  %s3047_s19 = scalar_lea.vmem %s2438_s18, 32  ;;  %p3052_p6 = scmp.lt.s32.totalorder %s2438_s18, %s2438_s18 }
  0x17   :  { %241 = vmatpush1.bf16.msra.mxu1 %v3158_v12  ;;  %199 = vmatprep.subr.bf16.mxu0 %v3165_v13  ;;  %v62_v33 = vpack.c.bf16 %v61_v28, %v60_v27  ;;  %v3262_v35 = vsel %vm176_vm0, %v2504_v31, 0  ;;  %v3270_v37 = vld [vmem:[%s3961_s1 + $0x6c] ss:$16 sps:$4 sm:$0xff]   ;;  %v3279_v38 = vld [vmem:[%s3961_s1 + $0x60] ss:$16 sps:$4 sm:$0xff]   ;;  %p3048_p5 = scmp.ne.s32.totalorder %s2438_s18, %s3047_s19  ;;  %p3053_p7 = scmp.lt.s32.totalorder %s3047_s19, %s3047_s19 }
  0x18   :  { %242 = vmatprep.subr.bf16.mxu1 %v3170_v14  ;;  %v3265_v36 = vsel %vm176_vm0, %v2506_v32, 0  ;;  %v3284_v39 = vld [vmem:[%s3961_s1 + $0x68] ss:$16 sps:$4 sm:$0xff]   ;;  %v3291_v40 = vld [vmem:[%s3961_s1 + $0x44] ss:$16 sps:$4 sm:$0xff]  }
  0x19   :  { %v3296_v41 = vld [vmem:[%s3961_s1 + $0x4c] ss:$16 sps:$4 sm:$0xff]   ;;  %v3305_v42 = vld [vmem:[%s3961_s1 + $0x40] ss:$16 sps:$4 sm:$0xff]   ;;  %v3310_v43 = vld [vmem:[%s3961_s1 + $0x48] ss:$16 sps:$4 sm:$0xff]   ;;  %p3054_p8 = por %p3053_p7, %p3052_p6 }
  0x1a   :  { %200 = vmatpush1.bf16.msra.mxu0 %v3175_v15  ;;  %v3317_v44 = vld [vmem:[%s3961_s1 + $0x24] ss:$16 sps:$4 sm:$0xff]   ;;  %v3322_v45 = vld [vmem:[%s3961_s1 + $0x2c] ss:$16 sps:$4 sm:$0xff]   ;;  %v3327_v46 = vld [vmem:[%s3961_s1 + $0x20] ss:$16 sps:$4 sm:$0xff]  }
  0x1b   :  { %243 = vmatpush1.bf16.msra.mxu1 %v3182_v16  ;;  %201 = vmatprep.subr.bf16.mxu0 %v3187_v17  ;;  %v3334_v47 = vld [vmem:[%s3961_s1 + $0x28] ss:$16 sps:$4 sm:$0xff]   ;;  %v3339_v48 = vld [vmem:[%s3961_s1 + $0x4] ss:$16 sps:$4 sm:$0xff]   ;;  %v3346_v49 = vld [vmem:[%s3961_s1 + $0xc] ss:$16 sps:$4 sm:$0xff]   ;;  %p3055_p9 = pnand %p3054_p8, %p3048_p5 }
  0x1c   :  { %244 = vmatprep.subr.bf16.mxu1 %v3194_v18  ;;  %v2528_v50 = vld [vmem:[%s3961_s1 + $0x1a0] sm:$0xff]  ;;  %v2529_v51 = vld [vmem:[%s3961_s1 + $0x1a8] sm:$0xff] }
  0x1d   :  { %v3357_v52 = vld [vmem:[%s3961_s1] ss:$16 sps:$4 sm:$0xff]   ;;  %v3364_v53 = vld [vmem:[%s3961_s1 + $0x8] ss:$16 sps:$4 sm:$0xff]   ;;  %v3372_v56 = vcombine.high %v2528_v50, %v2528_v50  ;;  %v3376_v57 = vcombine.high %v2529_v51, %v2529_v51  ;;  %v2546_v58 = vcombine.low %v2528_v50, %v2528_v50  ;;  %v2548_v59 = vcombine.low %v2529_v51, %v2529_v51  ;;  %v3381_v61 = vld [vmem:[%s3961_s1 + $0x184] ss:$16 sps:$4 sm:$0xff]  }
  0x1e   :  { %202 = vmatpush1.bf16.msra.mxu0 %v3199_v19  ;;  %v39_v54 = vld [vmem:[%s3960_s0] sm:$0xff]  ;;  %v40_v55 = vld [vmem:[%s3960_s0 + $0x8] sm:$0xff] }
  0x1f   :  { %245 = vmatpush1.bf16.msra.mxu1 %v3206_v20  ;;  %203 = vmatprep.subr.bf16.mxu0 %v3211_v21  ;;  %v41_v60 = vpack.c.bf16 %v40_v55, %v39_v54  ;;  %v3386_v62 = vld [vmem:[%s3961_s1 + $0x18c] ss:$16 sps:$4 sm:$0xff]   ;;  %v3395_v63 = vsel %vm176_vm0, %v2546_v58, 0  ;;  %v3398_v1 = vsel %vm176_vm0, %v2548_v59, 0  ;;  %v3403_v2 = vld [vmem:[%s3961_s1 + $0x180] ss:$16 sps:$4 sm:$0xff]  }
  0x20   :  { %246 = vmatprep.subr.bf16.mxu1 %v3218_v22  ;;  %v3408_v5 = vld [vmem:[%s3961_s1 + $0x188] ss:$16 sps:$4 sm:$0xff]   ;;  %v3415_v6 = vld [vmem:[%s3961_s1 + $0x164] ss:$16 sps:$4 sm:$0xff]   ;;  %v3420_v23 = vld [vmem:[%s3961_s1 + $0x16c] ss:$16 sps:$4 sm:$0xff]  }
  0x21   :  { %v3429_v25 = vld [vmem:[%s3961_s1 + $0x160] ss:$16 sps:$4 sm:$0xff]   ;;  %v3434_v27 = vld [vmem:[%s3961_s1 + $0x168] ss:$16 sps:$4 sm:$0xff]   ;;  %v3441_v28 = vld [vmem:[%s3961_s1 + $0x144] ss:$16 sps:$4 sm:$0xff]  }
  0x22   :  { %204 = vmatpush1.bf16.msra.mxu0 %v3226_v24  ;;  %v3446_v31 = vld [vmem:[%s3961_s1 + $0x14c] ss:$16 sps:$4 sm:$0xff]   ;;  %v3455_v32 = vld [vmem:[%s3961_s1 + $0x140] ss:$16 sps:$4 sm:$0xff]   ;;  %v3465_v50 = vld [vmem:[%s3961_s1 + $0x124] ss:$16 sps:$4 sm:$0xff]  }
  0x23   :  { %247 = vmatpush1.bf16.msra.mxu1 %v3234_v26  ;;  %2508 = vmatprep.subr.msk.bf16.mxu0 %vm176_vm0, %v3244_v29  ;;  %v3470_v51 = vld [vmem:[%s3961_s1 + $0x12c] ss:$16 sps:$4 sm:$0xff]   ;;  %v3479_v54 = vld [vmem:[%s3961_s1 + $0x120] ss:$16 sps:$4 sm:$0xff]   ;;  %v3484_v55 = vld [vmem:[%s3961_s1 + $0x128] ss:$16 sps:$4 sm:$0xff]  }
  0x24   :  { %2510 = vmatprep.subr.msk.bf16.mxu1 %vm176_vm0, %v3248_v30  ;;  %v466_v58 = vld [vmem:[%s3960_s0 + $0x2] sm:$0xff]  ;;  %v467_v59 = vld [vmem:[%s3960_s0 + $0xa] sm:$0xff] }
  0x25   :  { %2485 = vmatmul.mubr.msk.bf16.vlgmr.msra.gmra.mxu0 %vm172_vm1, %v62_v33 }
  0x26   :  { %2487 = vmatmul.mubr.msk.bf16.vlgmr.msra.gmra.mxu1 %vm172_vm1, %v62_v33  ;;  %387 = vmatpush1.bf16.msra.mxu0 %v3262_v35  ;;  %v3460_v33 = vld [vmem:[%s3961_s1 + $0x148] ss:$16 sps:$4 sm:$0xff]  }
  0x27   :  { %430 = vmatpush1.bf16.msra.mxu1 %v3265_v36  ;;  %388 = vmatprep.subr.bf16.mxu0 %v3255_v34 }
  0x28   :  { %431 = vmatprep.subr.bf16.mxu1 %v3270_v37  ;;  %412 = vmatprep.mubr.bf16.mxu0 %v3074_v0 }
  0x29   :  { %455 = vmatprep.mubr.bf16.mxu1 %v3074_v0 }
  0x2a   :  { %389 = vmatpush1.bf16.msra.mxu0 %v3279_v38 }
  0x2b   :  { %432 = vmatpush1.bf16.msra.mxu1 %v3284_v39  ;;  %390 = vmatprep.subr.bf16.mxu0 %v3291_v40 }
  0x2c   :  { %433 = vmatprep.subr.bf16.mxu1 %v3296_v41 }
  0x2e   :  { %391 = vmatpush1.bf16.msra.mxu0 %v3305_v42 }
  0x2f   :  { %434 = vmatpush1.bf16.msra.mxu1 %v3310_v43  ;;  %392 = vmatprep.subr.bf16.mxu0 %v3317_v44 }
  0x30   :  { %435 = vmatprep.subr.bf16.mxu1 %v3322_v45 }
  0x32   :  { %393 = vmatpush1.bf16.msra.mxu0 %v3327_v46 }
  0x33   :  { %436 = vmatpush1.bf16.msra.mxu1 %v3334_v47  ;;  %394 = vmatprep.subr.bf16.mxu0 %v3339_v48 }
  0x34   :  { %437 = vmatprep.subr.bf16.mxu1 %v3346_v49 }
  0x36   :  { %395 = vmatpush1.bf16.msra.mxu0 %v3357_v52 }
  0x37   :  { %438 = vmatpush1.bf16.msra.mxu1 %v3364_v53  ;;  %2550 = vmatprep.subr.msk.bf16.mxu0 %vm176_vm0, %v3372_v56 }
  0x38   :  { %2552 = vmatprep.subr.msk.bf16.mxu1 %vm176_vm0, %v3376_v57 }
  0x39   :  { %2509 = vmatmul.mubr.msk.bf16.vlgmr.msra.gmra.mxu0 %vm172_vm1, %v41_v60 }
  0x3a   :  { %2511 = vmatmul.mubr.msk.bf16.vlgmr.msra.gmra.mxu1 %vm172_vm1, %v41_v60  ;;  %600 = vmatpush1.bf16.msra.mxu0 %v3395_v63  ;;  %v468_v60 = vpack.c.bf16 %v467_v59, %v466_v58  ;;  %v2947_v58 = vld [vmem:[%s3962_s2 + $0x1b4] ss:$8 sps:$4 sm:$0xff]   ;;  %v2948_v59 = vld [vmem:[%s3962_s2 + $0xa0] ss:$8 sps:$4 sm:$0xff]  }
  0x3b   :  { %643 = vmatpush1.bf16.msra.mxu1 %v3398_v1  ;;  %601 = vmatprep.subr.bf16.mxu0 %v3381_v61 }
  0x3c   :  { %644 = vmatprep.subr.bf16.mxu1 %v3386_v62  ;;  %625 = vmatprep.mubr.bf16.mxu0 %v3074_v0 }
  0x3d   :  { %668 = vmatprep.mubr.bf16.mxu1 %v3074_v0 }
  0x3e   :  { %602 = vmatpush1.bf16.msra.mxu0 %v3403_v2 }
  0x3f   :  { %645 = vmatpush1.bf16.msra.mxu1 %v3408_v5  ;;  %603 = vmatprep.subr.bf16.mxu0 %v3415_v6 }
  0x40   :  { %646 = vmatprep.subr.bf16.mxu1 %v3420_v23 }
  0x42   :  { %604 = vmatpush1.bf16.msra.mxu0 %v3429_v25 }
  0x43   :  { %647 = vmatpush1.bf16.msra.mxu1 %v3434_v27  ;;  %605 = vmatprep.subr.bf16.mxu0 %v3441_v28 }
  0x44   :  { %648 = vmatprep.subr.bf16.mxu1 %v3446_v31 }
  0x46   :  { %606 = vmatpush1.bf16.msra.mxu0 %v3455_v32 }
  0x47   :  { %649 = vmatpush1.bf16.msra.mxu1 %v3460_v33  ;;  %607 = vmatprep.subr.bf16.mxu0 %v3465_v50 }
  0x48   :  { %650 = vmatprep.subr.bf16.mxu1 %v3470_v51 }
  0x4a   :  { %608 = vmatpush1.bf16.msra.mxu0 %v3479_v54 }
  0x4b   :  { %651 = vmatpush1.bf16.msra.mxu1 %v3484_v55  ;;  %2596 = vmatprep.subr.msk.bf16.mxu0 %vm176_vm0, %v3124_v3  ;;  %v2556_v3 = vld [vmem:[%s3960_s0 + $0x19] sm:$0xff] }
  0x4c   :  { %2598 = vmatprep.subr.msk.bf16.mxu1 %vm176_vm0, %v3126_v4  ;;  %v2557_v4 = vld [vmem:[%s3960_s0 + $0x21] sm:$0xff] }
  0x4d   :  { %2551 = vmatmul.mubr.msk.bf16.vlgmr.msra.gmra.mxu0 %vm172_vm1, %v468_v60 }
  0x4e   :  { %2553 = vmatmul.mubr.msk.bf16.vlgmr.msra.gmra.mxu1 %vm172_vm1, %v468_v60  ;;  %942 = vmatpush1.bf16.msra.mxu0 %v3143_v9  ;;  %v2555_v9 = vld [vmem:[%s3960_s0 + $0x20] sm:$0xff] }
  0x4f   :  { %985 = vmatpush1.bf16.msra.mxu1 %v3146_v10  ;;  %943 = vmatprep.subr.bf16.mxu0 %v3131_v7  ;;  %v811_v7 = vpack.c.bf16 %v2557_v4, %v2556_v3  ;;  %v2950_v60 = vld [vmem:[%s3962_s2 + $0xa4] ss:$8 sps:$4 sm:$0xff]   ;;  %v2956_v4 = vld [vmem:[%s3962_s2 + $0x94] ss:$8 sps:$4 sm:$0xff]  }
  0x50   :  { %986 = vmatprep.subr.bf16.mxu1 %v3136_v8  ;;  %967 = vmatprep.mubr.bf16.mxu0 %v3074_v0  ;;  %v2554_v8 = vld [vmem:[%s3960_s0 + $0x18] sm:$0xff]  ;;  %v2953_v3 = vld [vmem:[%s3962_s2 + $0x1a4] ss:$8 sps:$4 sm:$0xff]  }
  0x51   :  { %1010 = vmatprep.mubr.bf16.mxu1 %v3074_v0  ;;  %v790_v10 = vpack.c.bf16 %v2555_v9, %v2554_v8  ;;  %v2959_v8 = vld [vmem:[%s3962_s2 + $0x194] ss:$8 sps:$4 sm:$0xff]  }
  0x52   :  { %944 = vmatpush1.bf16.msra.mxu0 %v3151_v11  ;;  %v2624_v11 = vld [vmem:[%s3960_s0 + $0x1a] sm:$0xff] }
  0x53   :  { %987 = vmatpush1.bf16.msra.mxu1 %v3158_v12  ;;  %945 = vmatprep.subr.bf16.mxu0 %v3165_v13  ;;  %v2625_v12 = vld [vmem:[%s3960_s0 + $0x22] sm:$0xff] }
  0x54   :  { %988 = vmatprep.subr.bf16.mxu1 %v3170_v14  ;;  %v1214_v13 = vpack.c.bf16 %v2625_v12, %v2624_v11  ;;  %v2872_v14 = vld [vmem:[%s3962_s2 + $0x74] ss:$8 sps:$4 sm:$0xff]   ;;  %v2954_v11 = vld [vmem:[%s3962_s2 + $0x90] ss:$8 sps:$4 sm:$0xff]   ;;  %v2962_v12 = vld [vmem:[%s3962_s2 + $0x84] ss:$8 sps:$4 sm:$0xff]  }
  0x56   :  { %946 = vmatpush1.bf16.msra.mxu0 %v3175_v15  ;;  %v2870_v15 = vld [vmem:[%s3962_s2 + $0x70] ss:$8 sps:$4 sm:$0xff]  }
  0x57   :  { %989 = vmatpush1.bf16.msra.mxu1 %v3182_v16  ;;  %947 = vmatprep.subr.bf16.mxu0 %v3187_v17  ;;  %v2873_v16 = vld [vmem:[%s3962_s2 + $0x170] ss:$8 sps:$4 sm:$0xff]   ;;  %v2875_v17 = vld [vmem:[%s3962_s2 + $0x174] ss:$8 sps:$4 sm:$0xff]  }
  0x58   :  { %990 = vmatprep.subr.bf16.mxu1 %v3194_v18  ;;  %v2876_v18 = vld [vmem:[%s3962_s2 + $0x60] ss:$8 sps:$4 sm:$0xff]  }
  0x5a   :  { %948 = vmatpush1.bf16.msra.mxu0 %v3199_v19  ;;  %v2878_v19 = vld [vmem:[%s3962_s2 + $0x64] ss:$8 sps:$4 sm:$0xff]  }
  0x5b   :  { %991 = vmatpush1.bf16.msra.mxu1 %v3206_v20  ;;  %949 = vmatprep.subr.bf16.mxu0 %v3211_v21  ;;  %v2881_v20 = vld [vmem:[%s3962_s2 + $0x164] ss:$8 sps:$4 sm:$0xff]   ;;  %v2884_v21 = vld [vmem:[%s3962_s2 + $0x54] ss:$8 sps:$4 sm:$0xff]  }
  0x5c   :  { %992 = vmatprep.subr.bf16.mxu1 %v3218_v22  ;;  %v2879_v22 = vld [vmem:[%s3962_s2 + $0x160] ss:$8 sps:$4 sm:$0xff]  }
  0x5e   :  { %950 = vmatpush1.bf16.msra.mxu0 %v3226_v24  ;;  %v2887_v24 = vld [vmem:[%s3962_s2 + $0x154] ss:$8 sps:$4 sm:$0xff]  }
  0x5f   :  { %993 = vmatpush1.bf16.msra.mxu1 %v3234_v26  ;;  %2620 = vmatprep.subr.msk.bf16.mxu0 %vm176_vm0, %v3244_v29  ;;  %v2882_v26 = vld [vmem:[%s3962_s2 + $0x50] ss:$8 sps:$4 sm:$0xff]   ;;  %v2890_v29 = vld [vmem:[%s3962_s2 + $0x44] ss:$8 sps:$4 sm:$0xff]  }
  0x60   :  { %2622 = vmatprep.subr.msk.bf16.mxu1 %vm176_vm0, %v3248_v30  ;;  %v2885_v30 = vld [vmem:[%s3962_s2 + $0x150] ss:$8 sps:$4 sm:$0xff]  }
  0x61   :  { %2597 = vmatmul.mubr.msk.bf16.vlgmr.msra.gmra.mxu0 %vm172_vm1, %v811_v7 }
  0x62   :  { %2599 = vmatmul.mubr.msk.bf16.vlgmr.msra.gmra.mxu1 %vm172_vm1, %v811_v7  ;;  %1133 = vmatpush1.bf16.msra.mxu0 %v3262_v35  ;;  %v2893_v35 = vld [vmem:[%s3962_s2 + $0x144] ss:$8 sps:$4 sm:$0xff]   ;;  %v2951_v7 = vld [vmem:[%s3962_s2 + $0x1a0] ss:$8 sps:$4 sm:$0xff]  }
  0x63   :  { %1176 = vmatpush1.bf16.msra.mxu1 %v3265_v36  ;;  %1134 = vmatprep.subr.bf16.mxu0 %v3255_v34  ;;  %v2888_v34 = vld [vmem:[%s3962_s2 + $0x40] ss:$8 sps:$4 sm:$0xff]  }
  0x64   :  { %1177 = vmatprep.subr.bf16.mxu1 %v3270_v37  ;;  %1158 = vmatprep.mubr.bf16.mxu0 %v3074_v0  ;;  %v2891_v36 = vld [vmem:[%s3962_s2 + $0x140] ss:$8 sps:$4 sm:$0xff]   ;;  %v2896_v37 = vld [vmem:[%s3962_s2 + $0x34] ss:$8 sps:$4 sm:$0xff]  }
  0x65   :  { %1201 = vmatprep.mubr.bf16.mxu1 %v3074_v0 }
  0x66   :  { %1135 = vmatpush1.bf16.msra.mxu0 %v3279_v38  ;;  %v2894_v38 = vld [vmem:[%s3962_s2 + $0x30] ss:$8 sps:$4 sm:$0xff]  }
  0x67   :  { %1178 = vmatpush1.bf16.msra.mxu1 %v3284_v39  ;;  %1136 = vmatprep.subr.bf16.mxu0 %v3291_v40  ;;  %v2899_v39 = vld [vmem:[%s3962_s2 + $0x134] ss:$8 sps:$4 sm:$0xff]   ;;  %v2897_v40 = vld [vmem:[%s3962_s2 + $0x130] ss:$8 sps:$4 sm:$0xff]  }
  0x68   :  { %1179 = vmatprep.subr.bf16.mxu1 %v3296_v41  ;;  %v2902_v41 = vld [vmem:[%s3962_s2 + $0x24] ss:$8 sps:$4 sm:$0xff]  }
  0x6a   :  { %1137 = vmatpush1.bf16.msra.mxu0 %v3305_v42  ;;  %v2900_v42 = vld [vmem:[%s3962_s2 + $0x20] ss:$8 sps:$4 sm:$0xff]  }
  0x6b   :  { %1180 = vmatpush1.bf16.msra.mxu1 %v3310_v43  ;;  %1138 = vmatprep.subr.bf16.mxu0 %v3317_v44  ;;  %v2905_v43 = vld [vmem:[%s3962_s2 + $0x124] ss:$8 sps:$4 sm:$0xff]   ;;  %v2903_v44 = vld [vmem:[%s3962_s2 + $0x120] ss:$8 sps:$4 sm:$0xff]  }
  0x6c   :  { %1181 = vmatprep.subr.bf16.mxu1 %v3322_v45  ;;  %v2908_v45 = vld [vmem:[%s3962_s2 + $0x14] ss:$8 sps:$4 sm:$0xff]  }
  0x6e   :  { %1139 = vmatpush1.bf16.msra.mxu0 %v3327_v46  ;;  %v2906_v46 = vld [vmem:[%s3962_s2 + $0x10] ss:$8 sps:$4 sm:$0xff]  }
  0x6f   :  { %1182 = vmatpush1.bf16.msra.mxu1 %v3334_v47  ;;  %1140 = vmatprep.subr.bf16.mxu0 %v3339_v48  ;;  %v2911_v47 = vld [vmem:[%s3962_s2 + $0x114] ss:$8 sps:$4 sm:$0xff]   ;;  %v2909_v48 = vld [vmem:[%s3962_s2 + $0x110] ss:$8 sps:$4 sm:$0xff]  }
  0x70   :  { %1183 = vmatprep.subr.bf16.mxu1 %v3346_v49  ;;  %v2914_v49 = vld [vmem:[%s3962_s2 + $0x4] ss:$8 sps:$4 sm:$0xff]  }
  0x72   :  { %1141 = vmatpush1.bf16.msra.mxu0 %v3357_v52  ;;  %v2912_v52 = vld [vmem:[%s3962_s2] ss:$8 sps:$4 sm:$0xff]  }
  0x73   :  { %1184 = vmatpush1.bf16.msra.mxu1 %v3364_v53  ;;  %2664 = vmatprep.subr.msk.bf16.mxu0 %vm176_vm0, %v3372_v56  ;;  %v2917_v53 = vld [vmem:[%s3962_s2 + $0x104] ss:$8 sps:$4 sm:$0xff]   ;;  %v2915_v56 = vld [vmem:[%s3962_s2 + $0x100] ss:$8 sps:$4 sm:$0xff]  }
  0x74   :  { %2666 = vmatprep.subr.msk.bf16.mxu1 %vm176_vm0, %v3376_v57  ;;  %v2920_v57 = vld [vmem:[%s3962_s2 + $0xf4] ss:$8 sps:$4 sm:$0xff]  }
  0x75   :  { %2621 = vmatmul.mubr.msk.bf16.vlgmr.msra.gmra.mxu0 %vm172_vm1, %v790_v10 }
  0x76   :  { %2623 = vmatmul.mubr.msk.bf16.vlgmr.msra.gmra.mxu1 %vm172_vm1, %v790_v10  ;;  %1345 = vmatpush1.bf16.msra.mxu0 %v3395_v63  ;;  %v2921_v63 = vld [vmem:[%s3962_s2 + $0x1f0] ss:$8 sps:$4 sm:$0xff]  }
  0x77   :  { %1388 = vmatpush1.bf16.msra.mxu1 %v3398_v1  ;;  %1346 = vmatprep.subr.bf16.mxu0 %v3381_v61  ;;  %v2918_v61 = vld [vmem:[%s3962_s2 + $0xf0] ss:$8 sps:$4 sm:$0xff]   ;;  %v2926_v1 = vld [vmem:[%s3962_s2 + $0xe4] ss:$8 sps:$4 sm:$0xff]  }
  0x78   :  { %1389 = vmatprep.subr.bf16.mxu1 %v3386_v62  ;;  %1370 = vmatprep.mubr.bf16.mxu0 %v3074_v0  ;;  %v2923_v62 = vld [vmem:[%s3962_s2 + $0x1f4] ss:$8 sps:$4 sm:$0xff]  }
  0x79   :  { %1413 = vmatprep.mubr.bf16.mxu1 %v3074_v0 }
  0x7a   :  { %1347 = vmatpush1.bf16.msra.mxu0 %v3403_v2  ;;  %v2924_v2 = vld [vmem:[%s3962_s2 + $0xe0] ss:$8 sps:$4 sm:$0xff]  }
  0x7b   :  { %1390 = vmatpush1.bf16.msra.mxu1 %v3408_v5  ;;  %1348 = vmatprep.subr.bf16.mxu0 %v3415_v6  ;;  %v2929_v5 = vld [vmem:[%s3962_s2 + $0x1e4] ss:$8 sps:$4 sm:$0xff]   ;;  %v2927_v6 = vld [vmem:[%s3962_s2 + $0x1e0] ss:$8 sps:$4 sm:$0xff]  }
  0x7c   :  { %1391 = vmatprep.subr.bf16.mxu1 %v3420_v23  ;;  %v2932_v23 = vld [vmem:[%s3962_s2 + $0xd4] ss:$8 sps:$4 sm:$0xff]  }
  0x7e   :  { %1349 = vmatpush1.bf16.msra.mxu0 %v3429_v25  ;;  %v2930_v25 = vld [vmem:[%s3962_s2 + $0xd0] ss:$8 sps:$4 sm:$0xff]  }
  0x7f   :  { %1392 = vmatpush1.bf16.msra.mxu1 %v3434_v27  ;;  %1350 = vmatprep.subr.bf16.mxu0 %v3441_v28  ;;  %v2935_v27 = vld [vmem:[%s3962_s2 + $0x1d4] ss:$8 sps:$4 sm:$0xff]   ;;  %v2933_v28 = vld [vmem:[%s3962_s2 + $0x1d0] ss:$8 sps:$4 sm:$0xff]  }
  0x80   :  { %1393 = vmatprep.subr.bf16.mxu1 %v3446_v31  ;;  %v2938_v31 = vld [vmem:[%s3962_s2 + $0xc4] ss:$8 sps:$4 sm:$0xff]  }
  0x82   :  { %1351 = vmatpush1.bf16.msra.mxu0 %v3455_v32  ;;  %v2936_v32 = vld [vmem:[%s3962_s2 + $0xc0] ss:$8 sps:$4 sm:$0xff]  }
  0x83   :  { %1394 = vmatpush1.bf16.msra.mxu1 %v3460_v33  ;;  %1352 = vmatprep.subr.bf16.mxu0 %v3465_v50  ;;  %v2941_v33 = vld [vmem:[%s3962_s2 + $0x1c4] ss:$8 sps:$4 sm:$0xff]   ;;  %v2939_v50 = vld [vmem:[%s3962_s2 + $0x1c0] ss:$8 sps:$4 sm:$0xff]  }
  0x84   :  { %1395 = vmatprep.subr.bf16.mxu1 %v3470_v51  ;;  %v2944_v51 = vld [vmem:[%s3962_s2 + $0xb4] ss:$8 sps:$4 sm:$0xff]  }
  0x86   :  { %1353 = vmatpush1.bf16.msra.mxu0 %v3479_v54  ;;  %v2942_v54 = vld [vmem:[%s3962_s2 + $0xb0] ss:$8 sps:$4 sm:$0xff]  }
  0x87   :  { %1396 = vmatpush1.bf16.msra.mxu1 %v3484_v55  ;;  %1953 = vmatprep.subr.bf16.mxu0 %v2872_v14  ;;  %v2945_v55 = vld [vmem:[%s3962_s2 + $0x1b0] ss:$8 sps:$4 sm:$0xff]   ;;  %v2965_v14 = vld [vmem:[%s3962_s2 + $0x184] ss:$8 sps:$4 sm:$0xff]  }
  0x88   :  { %1994 = vmatprep.subr.bf16.mxu1 %v2875_v17  ;;  %v2960_v17 = vld [vmem:[%s3962_s2 + $0x80] ss:$8 sps:$4 sm:$0xff]  }
  0x89   :  { %2665 = vmatmul.mubr.msk.bf16.vlgmr.msra.gmra.mxu0 %vm172_vm1, %v1214_v13 }
  0x8a   :  { %2667 = vmatmul.mubr.msk.bf16.vlgmr.msra.gmra.mxu1 %vm172_vm1, %v1214_v13  ;;  %1954 = vmatpush1.bf16.msra.mxu0 %v2870_v15  ;;  %v2957_v13 = vld [vmem:[%s3962_s2 + $0x190] ss:$8 sps:$4 sm:$0xff]  }
  0x8b   :  { %1995 = vmatpush1.bf16.msra.mxu1 %v2873_v16  ;;  %1955 = vmatprep.subr.bf16.mxu0 %v2878_v19 }
  0x8c   :  { %1996 = vmatprep.subr.bf16.mxu1 %v2881_v20 }
  0x8e   :  { %1956 = vmatpush1.bf16.msra.mxu0 %v2876_v18  ;;  %v2963_v18 = vld [vmem:[%s3962_s2 + $0x180] ss:$8 sps:$4 sm:$0xff]  }
  0x8f   :  { %1957 = vmatprep.subr.bf16.mxu0 %v2884_v21  ;;  %1997 = vmatpush1.bf16.msra.mxu1 %v2879_v22 }
  0x90   :  { %1998 = vmatprep.subr.bf16.mxu1 %v2887_v24  ;;  %v2969_v24 = vld [vmem:[%s3963_s3 + $0x74] ss:$8 sps:$4 sm:$0xff]  }
  0x92   :  { %1958 = vmatpush1.bf16.msra.mxu0 %v2882_v26 }
  0x93   :  { %1959 = vmatprep.subr.bf16.mxu0 %v2890_v29  ;;  %1999 = vmatpush1.bf16.msra.mxu1 %v2885_v30 }
  0x94   :  { %2000 = vmatprep.subr.bf16.mxu1 %v2893_v35  ;;  %v689_v35 = vlaneseq }
  0x96   :  { %1960 = vmatpush1.bf16.msra.mxu0 %v2888_v34  ;;  %vm3818_vm2 = vcmp.lt.s32.totalorder %v689_v35, 512 }
  0x97   :  { %2001 = vmatpush1.bf16.msra.mxu1 %v2891_v36  ;;  %1961 = vmatprep.subr.bf16.mxu0 %v2896_v37 }
  0x98   :  { %2002 = vmatprep.subr.bf16.mxu1 %v2899_v39 }
  0x9a   :  { %1962 = vmatpush1.bf16.msra.mxu0 %v2894_v38  ;;  %v3793_v38 = vshrl.u32 %v689_v35, 7 }
  0x9b   :  { %2003 = vmatpush1.bf16.msra.mxu1 %v2897_v40  ;;  %1963 = vmatprep.subr.bf16.mxu0 %v2902_v41 }
  0x9c   :  { %2004 = vmatprep.subr.bf16.mxu1 %v2905_v43  ;;  %v3796_v41 = vsub.s32 0, %v3793_v38  ;;  %v687_v43 = vld [vmem:[%s3965_s5] ss:$8 sm:$0xf] }
  0x9e   :  { %1964 = vmatpush1.bf16.msra.mxu0 %v2900_v42  ;;  %v699_v42 = vsub.s32 2, %v3793_v38 }
  0x9f   :  { %2005 = vmatpush1.bf16.msra.mxu1 %v2903_v44  ;;  %1965 = vmatprep.subr.bf16.mxu0 %v2908_v45  ;;  %v3803_v44 = vsub.s32 1, %v3793_v38  ;;  %v703_v45 = vsub.s32 3, %v3793_v38 }
  0xa0   :  { %2006 = vmatprep.subr.bf16.mxu1 %v2911_v47 }
  0xa2   :  { %1966 = vmatpush1.bf16.msra.mxu0 %v2906_v46 }
  0xa3   :  { %2007 = vmatpush1.bf16.msra.mxu1 %v2909_v48  ;;  %1967 = vmatprep.subr.bf16.mxu0 %v2914_v49 }
  0xa4   :  { %2008 = vmatprep.subr.bf16.mxu1 %v2917_v53 }
  0xa6   :  { %1968 = vmatpush1.bf16.msra.mxu0 %v2912_v52 }
  0xa7   :  { %2009 = vmatpush1.bf16.msra.mxu1 %v2915_v56  ;;  %1969 = vmatprep.subr.bf16.mxu0 %v2920_v57  ;;  %v692_v57 = vrot.slane %v687_v43, %v3796_v41 }
  0xa8   :  { %2010 = vmatprep.subr.bf16.mxu1 %v2923_v62  ;;  %v700_v62 = vrot.slane %v687_v43, %v699_v42 }
  0xaa   :  { %1970 = vmatpush2.bf16.msra.mxu0 %v2918_v61 }
  0xab   :  { %2011 = vmatpush2.bf16.msra.mxu1 %v2921_v63  ;;  %1971 = vmatprep.subr.bf16.mxu0 %v2926_v1 }
  0xac   :  { %2012 = vmatprep.subr.bf16.mxu1 %v2929_v5  ;;  %v696_v5 = vrot.slane %v687_v43, %v3803_v44 }
  0xae   :  { %1972 = vmatpush2.bf16.msra.mxu0 %v2924_v2 }
  0xaf   :  { %2013 = vmatpush2.bf16.msra.mxu1 %v2927_v6  ;;  %1973 = vmatprep.subr.bf16.mxu0 %v2932_v23  ;;  %v704_v23 = vrot.slane %v687_v43, %v703_v45 }
  0xb0   :  { %2014 = vmatprep.subr.bf16.mxu1 %v2935_v27 }
  0xb2   :  { %1974 = vmatpush2.bf16.msra.mxu0 %v2930_v25 }
  0xb3   :  { %2015 = vmatpush2.bf16.msra.mxu1 %v2933_v28  ;;  %1975 = vmatprep.subr.bf16.mxu0 %v2938_v31 }
  0xb4   :  { %2016 = vmatprep.subr.bf16.mxu1 %v2941_v33 }
  0xb6   :  { %1976 = vmatpush2.bf16.msra.mxu0 %v2936_v32 }
  0xb7   :  { %2017 = vmatpush2.bf16.msra.mxu1 %v2939_v50  ;;  %1977 = vmatprep.subr.bf16.mxu0 %v2944_v51 }
  0xb8   :  { %2018 = vmatprep.subr.bf16.mxu1 %v2947_v58 }
  0xba   :  { %1978 = vmatpush2.bf16.msra.mxu0 %v2942_v54 }
  0xbb   :  { %2019 = vmatpush2.bf16.msra.mxu1 %v2945_v55  ;;  %1979 = vmatprep.subr.bf16.mxu0 %v2950_v60 }
  0xbc   :  { %2020 = vmatprep.subr.bf16.mxu1 %v2953_v3 }
  0xbe   :  { %1980 = vmatpush2.bf16.msra.mxu0 %v2948_v59 }
  0xbf   :  { %1981 = vmatprep.subr.bf16.mxu0 %v2956_v4  ;;  %2021 = vmatpush2.bf16.msra.mxu1 %v2951_v7 }
  0xc0   :  { %2022 = vmatprep.subr.bf16.mxu1 %v2959_v8 }
  0xc2   :  { %1982 = vmatpush2.bf16.msra.mxu0 %v2954_v11 }
  0xc3   :  { %1983 = vmatprep.subr.bf16.mxu0 %v2962_v12  ;;  %2023 = vmatpush2.bf16.msra.mxu1 %v2957_v13 }
  0xc4   :  { %2024 = vmatprep.subr.bf16.mxu1 %v2965_v14 }
  0xc6   :  { %1984 = vmatpush2.bf16.msra.mxu0 %v2960_v17 }
  0xc7   :  { %2025 = vmatpush2.bf16.msra.mxu1 %v2963_v18  ;;  %2244 = vmatprep.subr.bf16.mxu0 %v2969_v24 }
  0xc8   :  { %2390 = vmatprep.subr.bf16.mxu1 %v3074_v0 }
  0xe5   :  { %v223_v9 = vpop.f32.mrf.mxu0 }
  0xe6   :  { %v266_v10 = vpop.f32.mrf.mxu1 }
  0xe7   :  { %v225_v15 = vpop.f32.mrf.mxu0 }
  0xe8   :  { %v268_v16 = vpop.f32.mrf.mxu1 }
  0xe9   :  { %v227_v19 = vpop.f32.mrf.mxu0 }
  0xea   :  { %v270_v20 = vpop.f32.mrf.mxu1 }
  0xeb   :  { %v229_v21 = vpop.f32.mrf.mxu0 }
  0xec   :  { %v272_v22 = vpop.f32.mrf.mxu1 }
  0xf9   :  { %v414_v26 = vpop.f32.mrf.mxu0 }
  0xfa   :  { %v457_v29 = vpop.f32.mrf.mxu1  ;;  %v415_v46 = vadd.f32 %v414_v26, %v223_v9 }
  0xfb   :  { %v416_v30 = vpop.f32.mrf.mxu0  ;;  %v458_v47 = vadd.f32 %v457_v29, %v266_v10 }
  0xfc   :  { %v459_v34 = vpop.f32.mrf.mxu1  ;;  %v417_v52 = vadd.f32 %v416_v30, %v225_v15 }
  0xfd   :  { %v418_v36 = vpop.f32.mrf.mxu0  ;;  %v460_v53 = vadd.f32 %v459_v34, %v268_v16 }
  0xfe   :  { %v461_v37 = vpop.f32.mrf.mxu1  ;;  %v419_v25 = vadd.f32 %v418_v36, %v227_v19 }
  0xff   :  { %v420_v39 = vpop.f32.mrf.mxu0  ;;  %v462_v27 = vadd.f32 %v461_v37, %v270_v20 }
 0x100   :  { %v463_v40 = vpop.f32.mrf.mxu1  ;;  %v421_v32 = vadd.f32 %v420_v39, %v229_v21  ;;  %v3075_v39 = vmov 1966171168  }
 0x101   :  { %v464_v33 = vadd.f32 %v463_v40, %v272_v22  ;;  %v760_v40 = vunpack.c.l.s4 %v3075_v39 }
 0x10d   :  { %v627_v48 = vpop.f32.mrf.mxu0 }
 0x10e   :  { %v670_v49 = vpop.f32.mrf.mxu1  ;;  %v679_v56 = vadd.f32 %v627_v48, %v415_v46 }
 0x10f   :  { %v681_v61 = vadd.f32 %v670_v49, %v458_v47  ;;  %v629_v63 = vpop.f32.mrf.mxu0 }
 0x110   :  { %v672_v1 = vpop.f32.mrf.mxu1  ;;  %v680_v2 = vadd.f32 %v629_v63, %v417_v52  ;;  %v709_v50 = vadd.f32 %v692_v57, %v679_v56 }
 0x111   :  { %v682_v6 = vadd.f32 %v672_v1, %v460_v53  ;;  %v631_v28 = vpop.f32.mrf.mxu0  ;;  %v711_v51 = vadd.f32 %v700_v62, %v681_v61 }
 0x112   :  { %v674_v31 = vpop.f32.mrf.mxu1  ;;  %v683_v54 = vadd.f32 %v631_v28, %v419_v25  ;;  %v710_v60 = vadd.f32 %v696_v5, %v680_v2  ;;  %v717_v12 = vmax.f32 %v709_v50, 0.0 }
 0x113   :  { %v685_v55 = vadd.f32 %v674_v31, %v462_v27  ;;  %v633_v58 = vpop.f32.mrf.mxu0  ;;  %v712_v3 = vadd.f32 %v704_v23, %v682_v6  ;;  %v719_v13 = vmax.f32 %v711_v51, 0.0 }
 0x114   :  { %v676_v59 = vpop.f32.mrf.mxu1  ;;  %v684_v4 = vadd.f32 %v633_v58, %v421_v32  ;;  %v713_v8 = vadd.f32 %v692_v57, %v683_v54  ;;  %v718_v16 = vmax.f32 %v710_v60, 0.0  ;;  %v761_v57 = vunpack.c.0.s8 %v760_v40 }
 0x115   :  { %v686_v7 = vadd.f32 %v676_v59, %v464_v33  ;;  %v715_v9 = vadd.f32 %v700_v62, %v685_v55  ;;  %v720_v17 = vmax.f32 %v712_v3, 0.0 }
 0x116   :  { %v714_v10 = vadd.f32 %v696_v5, %v684_v4  ;;  %v721_v14 = vmax.f32 %v713_v8, 0.0  ;;  %v3813_v6 = vsub.s32 %v761_v57, %v3793_v38 }
 0x117   :  { %v716_v11 = vadd.f32 %v704_v23, %v686_v7  ;;  %v723_v15 = vmax.f32 %v715_v9, 0.0 }
 0x118   :  { %v722_v18 = vmax.f32 %v714_v10, 0.0  ;;  %v725_v20 = vadd.f32 %v721_v14, %v717_v12 }
 0x119   :  { %v724_v19 = vmax.f32 %v716_v11, 0.0  ;;  %v739_v21 = vadd.f32 %v723_v15, %v719_v13 }
 0x11a   :  { %v732_v22 = vadd.f32 %v722_v18, %v718_v16  ;;  %v726_v26 = vrot.slane %v725_v20, 4 }
 0x11b   :  { %v746_v24 = vadd.f32 %v724_v19, %v720_v17  ;;  %v740_v29 = vrot.slane %v739_v21, 4  ;;  %v1432_v17 = vld [vmem:[%s3965_s5] ss:$8 sm:$0xf] }
 0x11c   :  { %v733_v30 = vrot.slane %v732_v22, 4  ;;  %v727_v36 = vadd.f32 %v726_v26, %v725_v20  ;;  %v1441_v40 = vrot.slane %v1432_v17, %v3803_v44 }
 0x11d   :  { %v747_v34 = vrot.slane %v746_v24, 4  ;;  %v741_v37 = vadd.f32 %v740_v29, %v739_v21  ;;  %v1437_v29 = vrot.slane %v1432_v17, %v3796_v41 }
 0x11e   :  { %v734_v43 = vadd.f32 %v733_v30, %v732_v22  ;;  %v728_v47 = vrot.slane %v727_v36, 2 }
 0x11f   :  { %v748_v46 = vadd.f32 %v747_v34, %v746_v24  ;;  %v742_v48 = vrot.slane %v741_v37, 2  ;;  %v1445_v34 = vrot.slane %v1432_v17, %v699_v42 }
 0x120   :  { %v735_v49 = vrot.slane %v734_v43, 2  ;;  %v729_v53 = vadd.f32 %v728_v47, %v727_v36 }
 0x121   :  { %v749_v52 = vrot.slane %v748_v46, 2  ;;  %v743_v56 = vadd.f32 %v742_v48, %v741_v37  ;;  %v969_v55 = vpop.f32.mrf.mxu0 }
 0x122   :  { %v736_v61 = vadd.f32 %v735_v49, %v734_v43  ;;  %v730_v63 = vrot.slane %v729_v53, 1  ;;  %v1012_v58 = vpop.f32.mrf.mxu1 }
 0x123   :  { %v750_v62 = vadd.f32 %v749_v52, %v748_v46  ;;  %v744_v1 = vrot.slane %v743_v56, 1  ;;  %v971_v60 = vpop.f32.mrf.mxu0  ;;  %v1449_v46 = vrot.slane %v1432_v17, %v703_v45 }
 0x124   :  { %v737_v2 = vrot.slane %v736_v61, 1  ;;  %v731_v23 = vadd.f32 %v730_v63, %v729_v53  ;;  %v1014_v3 = vpop.f32.mrf.mxu1 }
 0x125   :  { %v751_v5 = vrot.slane %v750_v62, 1  ;;  %v745_v25 = vadd.f32 %v744_v1, %v743_v56  ;;  %v973_v4 = vpop.f32.mrf.mxu0 }
 0x126   :  { %v738_v27 = vadd.f32 %v737_v2, %v736_v61  ;;  %v1016_v7 = vpop.f32.mrf.mxu1 }
 0x127   :  { %v752_v28 = vadd.f32 %v751_v5, %v750_v62  ;;  %v975_v8 = vpop.f32.mrf.mxu0 }
 0x128   :  { %v757_v31 = vcombine.low %v731_v23, %v738_v27  ;;  %v1018_v9 = vpop.f32.mrf.mxu1 }
 0x129   :  { %v758_v32 = vcombine.low %v745_v25, %v752_v28 }
 0x12a   :  { %v765_v33 = vrot.slane %v757_v31, %v3813_v6 }
 0x12b   :  { %v772_v50 = vrot.slane %v758_v32, %v3813_v6 }
 0x12d   :  { %v773_v51 = vcombine.low %v765_v33, %v772_v50 }
 0x12f   :  { %v780_v59 = vrot.slane %v773_v51, %v3813_v6 }
 0x131   :  { %786 = vst.msk [vmem:[#allocation2] ss:$2 sm:$0xf] %vm3818_vm2, %v780_v59 }
 0x135   :  { %v1160_v10 = vpop.f32.mrf.mxu0 }
 0x136   :  { %v1203_v11 = vpop.f32.mrf.mxu1  ;;  %v1161_v18 = vadd.f32 %v1160_v10, %v969_v55 }
 0x137   :  { %v1162_v12 = vpop.f32.mrf.mxu0  ;;  %v1204_v19 = vadd.f32 %v1203_v11, %v1012_v58 }
 0x138   :  { %v1205_v35 = vpop.f32.mrf.mxu1  ;;  %v1163_v22 = vadd.f32 %v1162_v12, %v971_v60 }
 0x139   :  { %v1164_v13 = vpop.f32.mrf.mxu0  ;;  %v1206_v24 = vadd.f32 %v1205_v35, %v1014_v3 }
 0x13a   :  { %v1207_v14 = vpop.f32.mrf.mxu1  ;;  %v1165_v47 = vadd.f32 %v1164_v13, %v973_v4 }
 0x13b   :  { %v1166_v15 = vpop.f32.mrf.mxu0  ;;  %v1208_v48 = vadd.f32 %v1207_v14, %v1016_v7 }
 0x13c   :  { %v1209_v16 = vpop.f32.mrf.mxu1  ;;  %v1167_v53 = vadd.f32 %v1166_v15, %v975_v8 }
 0x13d   :  { %v1210_v56 = vadd.f32 %v1209_v16, %v1018_v9 }
 0x149   :  { %v1372_v20 = vpop.f32.mrf.mxu0 }
 0x14a   :  { %v1415_v21 = vpop.f32.mrf.mxu1  ;;  %v1424_v26 = vadd.f32 %v1372_v20, %v1161_v18 }
 0x14b   :  { %v1426_v30 = vadd.f32 %v1415_v21, %v1204_v19  ;;  %v1374_v36 = vpop.f32.mrf.mxu0 }
 0x14c   :  { %v1417_v37 = vpop.f32.mrf.mxu1  ;;  %v1425_v39 = vadd.f32 %v1374_v36, %v1163_v22  ;;  %v1454_v57 = vadd.f32 %v1437_v29, %v1424_v26 }
 0x14d   :  { %v1427_v43 = vadd.f32 %v1417_v37, %v1206_v24  ;;  %v1376_v49 = vpop.f32.mrf.mxu0  ;;  %v1456_v61 = vadd.f32 %v1445_v34, %v1426_v30 }
 0x14e   :  { %v1419_v52 = vpop.f32.mrf.mxu1  ;;  %v1428_v62 = vadd.f32 %v1376_v49, %v1165_v47  ;;  %v1455_v2 = vadd.f32 %v1441_v40, %v1425_v39  ;;  %v1462_v32 = vmax.f32 %v1454_v57, 0.0 }
 0x14f   :  { %v1430_v63 = vadd.f32 %v1419_v52, %v1208_v48  ;;  %v1378_v42 = vpop.f32.mrf.mxu0  ;;  %v1457_v5 = vadd.f32 %v1449_v46, %v1427_v43  ;;  %v1464_v33 = vmax.f32 %v1456_v61, 0.0  ;;  %v3076_v52 = vmov 1983009808  }
 0x150   :  { %v1421_v1 = vpop.f32.mrf.mxu1  ;;  %v1429_v23 = vadd.f32 %v1378_v42, %v1167_v53  ;;  %v1458_v27 = vadd.f32 %v1437_v29, %v1428_v62  ;;  %v1463_v55 = vmax.f32 %v1455_v2, 0.0  ;;  %v1533_v53 = vunpack.c.l.s4 %v3076_v52 }
 0x151   :  { %v1431_v25 = vadd.f32 %v1421_v1, %v1210_v56  ;;  %v1460_v28 = vadd.f32 %v1445_v34, %v1430_v63  ;;  %v1465_v58 = vmax.f32 %v1457_v5, 0.0 }
 0x152   :  { %v1459_v31 = vadd.f32 %v1441_v40, %v1429_v23  ;;  %v1466_v50 = vmax.f32 %v1458_v27, 0.0  ;;  %v1534_v57 = vunpack.c.0.s8 %v1533_v53 }
 0x153   :  { %v1461_v45 = vadd.f32 %v1449_v46, %v1431_v25  ;;  %v1468_v51 = vmax.f32 %v1460_v28, 0.0  ;;  %v2967_v25 = vld [vmem:[%s3963_s3 + $0x70] ss:$8 sps:$4 sm:$0xff]   ;;  %v2970_v28 = vld [vmem:[%s3963_s3 + $0x60] ss:$8 sps:$4 sm:$0xff]  }
 0x154   :  { %v1467_v59 = vmax.f32 %v1459_v31, 0.0  ;;  %v1470_v3 = vadd.f32 %v1466_v50, %v1462_v32  ;;  %v1537_v61 = vsub.s32 %v1534_v57, %v3793_v38  ;;  %v2975_v31 = vld [vmem:[%s3963_s3 + $0x54] ss:$8 sps:$4 sm:$0xff]   ;;  %v2978_v32 = vld [vmem:[%s3963_s3 + $0x44] ss:$8 sps:$4 sm:$0xff]  }
 0x155   :  { %v1469_v60 = vmax.f32 %v1461_v45, 0.0  ;;  %v1484_v4 = vadd.f32 %v1468_v51, %v1464_v33  ;;  %v2973_v45 = vld [vmem:[%s3963_s3 + $0x50] ss:$8 sps:$4 sm:$0xff]   ;;  %v2976_v33 = vld [vmem:[%s3963_s3 + $0x40] ss:$8 sps:$4 sm:$0xff]  }
 0x156   :  { %v1477_v7 = vadd.f32 %v1467_v59, %v1463_v55  ;;  %v1471_v9 = vrot.slane %v1470_v3, 4  ;;  %v2981_v50 = vld [vmem:[%s3963_s3 + $0x34] ss:$8 sps:$4 sm:$0xff]   ;;  %v2979_v51 = vld [vmem:[%s3963_s3 + $0x30] ss:$8 sps:$4 sm:$0xff]  }
 0x157   :  { %v1491_v8 = vadd.f32 %v1469_v60, %v1465_v58  ;;  %v1485_v10 = vrot.slane %v1484_v4, 4  ;;  %v2984_v55 = vld [vmem:[%s3963_s3 + $0x24] ss:$8 sps:$4 sm:$0xff]   ;;  %v2982_v58 = vld [vmem:[%s3963_s3 + $0x20] ss:$8 sps:$4 sm:$0xff]  }
 0x158   :  { %v1478_v11 = vrot.slane %v1477_v7, 4  ;;  %v1472_v35 = vadd.f32 %v1471_v9, %v1470_v3  ;;  %v2987_v59 = vld [vmem:[%s3963_s3 + $0x14] ss:$8 sps:$4 sm:$0xff]   ;;  %v2985_v60 = vld [vmem:[%s3963_s3 + $0x10] ss:$8 sps:$4 sm:$0xff]  }
 0x159   :  { %v1492_v12 = vrot.slane %v1491_v8, 4  ;;  %v1486_v13 = vadd.f32 %v1485_v10, %v1484_v4  ;;  %v2990_v3 = vld [vmem:[%s3963_s3 + $0x4] ss:$8 sps:$4 sm:$0xff]   ;;  %v2988_v4 = vld [vmem:[%s3963_s3] ss:$8 sps:$4 sm:$0xff]  }
 0x15a   :  { %v1479_v14 = vadd.f32 %v1478_v11, %v1477_v7  ;;  %v1473_v16 = vrot.slane %v1472_v35, 2  ;;  %v2993_v7 = vld [vmem:[%s3963_s3 + $0xf4] ss:$8 sps:$4 sm:$0xff]   ;;  %v2996_v9 = vld [vmem:[%s3963_s3 + $0xe4] ss:$8 sps:$4 sm:$0xff]  }
 0x15b   :  { %v1493_v15 = vadd.f32 %v1492_v12, %v1491_v8  ;;  %v1487_v17 = vrot.slane %v1486_v13, 2  ;;  %v2991_v8 = vld [vmem:[%s3963_s3 + $0xf0] ss:$8 sps:$4 sm:$0xff]   ;;  %v2994_v10 = vld [vmem:[%s3963_s3 + $0xe0] ss:$8 sps:$4 sm:$0xff]  }
 0x15c   :  { %v1480_v18 = vrot.slane %v1479_v14, 2  ;;  %v1474_v20 = vadd.f32 %v1473_v16, %v1472_v35  ;;  %v2999_v11 = vld [vmem:[%s3963_s3 + $0xd4] ss:$8 sps:$4 sm:$0xff]   ;;  %v2997_v12 = vld [vmem:[%s3963_s3 + $0xd0] ss:$8 sps:$4 sm:$0xff]  }
 0x15d   :  { %v1494_v19 = vrot.slane %v1493_v15, 2  ;;  %v1488_v21 = vadd.f32 %v1487_v17, %v1486_v13  ;;  %v3002_v35 = vld [vmem:[%s3963_s3 + $0xc4] ss:$8 sps:$4 sm:$0xff]   ;;  %v3000_v13 = vld [vmem:[%s3963_s3 + $0xc0] ss:$8 sps:$4 sm:$0xff]  }
 0x15e   :  { %v1481_v22 = vadd.f32 %v1480_v18, %v1479_v14  ;;  %v1475_v26 = vrot.slane %v1474_v20, 1  ;;  %v3005_v14 = vld [vmem:[%s3963_s3 + $0xb4] ss:$8 sps:$4 sm:$0xff]   ;;  %v3008_v16 = vld [vmem:[%s3963_s3 + $0xa4] ss:$8 sps:$4 sm:$0xff]  }
 0x15f   :  { %v1495_v24 = vadd.f32 %v1494_v19, %v1493_v15  ;;  %v1489_v29 = vrot.slane %v1488_v21, 1  ;;  %v3003_v15 = vld [vmem:[%s3963_s3 + $0xb0] ss:$8 sps:$4 sm:$0xff]   ;;  %v3006_v17 = vld [vmem:[%s3963_s3 + $0xa0] ss:$8 sps:$4 sm:$0xff]  }
 0x160   :  { %v1482_v30 = vrot.slane %v1481_v22, 1  ;;  %v1476_v36 = vadd.f32 %v1475_v26, %v1474_v20  ;;  %v3011_v18 = vld [vmem:[%s3963_s3 + $0x94] ss:$8 sps:$4 sm:$0xff]   ;;  %v3009_v19 = vld [vmem:[%s3963_s3 + $0x90] ss:$8 sps:$4 sm:$0xff]  }
 0x161   :  { %v1496_v34 = vrot.slane %v1495_v24, 1  ;;  %v1490_v37 = vadd.f32 %v1489_v29, %v1488_v21  ;;  %v3014_v20 = vld [vmem:[%s3963_s3 + $0x84] ss:$8 sps:$4 sm:$0xff]   ;;  %v3012_v21 = vld [vmem:[%s3963_s3 + $0x80] ss:$8 sps:$4 sm:$0xff]   ;;  %v3017_v26 = vld [vmem:[#allocation3 + $0x28] sm:$0xff]  }
 0x162   :  { %v1483_v39 = vadd.f32 %v1482_v30, %v1481_v22  ;;  %v3015_v22 = vld [vmem:[#allocation3 + $0x38] sm:$0xff]   ;;  %v3018_v29 = vld [vmem:[#allocation3 + $0x20] sm:$0xff]  }
 0x163   :  { %v1497_v40 = vadd.f32 %v1496_v34, %v1495_v24  ;;  %v3016_v24 = vld [vmem:[#allocation3 + $0x30] sm:$0xff]   ;;  %v3019_v30 = vld [vmem:[#allocation3 + $0x18] sm:$0xff]  }
 0x164   :  { %v1502_v43 = vcombine.low %v1476_v36, %v1483_v39  ;;  %v3020_v34 = vld [vmem:[#allocation3 + $0x10] sm:$0xff]   ;;  %v3021_v36 = vld [vmem:[#allocation3 + $0x8] sm:$0xff]   ;;  %v3023_v39 = vld [vmem:[#allocation3 + $0x58] sm:$0xff]  }
 0x165   :  { %v1503_v46 = vcombine.low %v1490_v37, %v1497_v40  ;;  %v3022_v37 = vld [vmem:[#allocation3] sm:$0xff]   ;;  %v3024_v40 = vld [vmem:[#allocation3 + $0x50] sm:$0xff]  }
 0x166   :  { %v1510_v47 = vrot.slane %v1502_v43, %v3813_v6  ;;  %v2668_v43 = vld [vmem:[%s3965_s5 + $0x1] ss:$8 sm:$0x3] }
 0x167   :  { %v1517_v48 = vrot.slane %v1503_v46, %v3813_v6  ;;  %v1626_v46 = vrot.slane %v2668_v43, %v3796_v41 }
 0x169   :  { %v1518_v49 = vcombine.low %v1510_v47, %v1517_v48  ;;  %v1630_v47 = vrot.slane %v2668_v43, %v3803_v44 }
 0x16b   :  { %v1525_v56 = vrot.slane %v1518_v49, %v3813_v6  ;;  %v2972_v6 = vld [vmem:[%s3963_s3 + $0x64] ss:$8 sps:$4 sm:$0xff]  }
 0x16d   :  { %1528 = vst.msk [vmem:[#allocation2 + $0x1] ss:$2 sm:$0xf] %vm3818_vm2, %v1525_v56 }
 0x174   :  { %v1529_v62 = vld [vmem:[#allocation2] sm:$0xff] }
 0x175   :  { %v1538_v63 = vrot.slane %v1529_v62, %v1537_v61  ;;  %v1531_v42 = vcombine.high %v1529_v62, %v1529_v62 }
 0x177   :  { %v1546_v1 = vcombine.high %v1538_v63, %v1538_v63  ;;  %v1545_v2 = vrot.slane %v1531_v42, %v1537_v61  ;;  %v1552_v27 = vpack.c.bf16 %v1538_v63, %v1538_v63 }
 0x179   :  { %v1553_v5 = vpack.c.bf16 %v1546_v1, %v1546_v1  ;;  %v1547_v23 = vcombine.high %v1545_v2, %v1545_v2  ;;  %v1554_v38 = vpack.c.bf16 %v1545_v2, %v1545_v2 }
 0x17b   :  { %1985 = vmatprep.mubr.bf16.mxu0 %v1553_v5  ;;  %v1555_v54 = vpack.c.bf16 %v1547_v23, %v1547_v23 }
 0x17c   :  { %1986 = vmatmul.mubr.bf16.vlgmr.msra.gmra.mxu0 %v1552_v27 }
 0x17d   :  { %2026 = vmatprep.mubr.bf16.mxu1 %v1555_v54  ;;  %2245 = vmatpush1.bf16.msra.mxu0 %v2967_v25  ;;  %v3026_v54 = vld [vmem:[#allocation3 + $0x40] sm:$0xff]  }
 0x17e   :  { %2027 = vmatmul.mubr.bf16.vlgmr.msra.gmra.mxu1 %v1554_v38  ;;  %2246 = vmatprep.subr.bf16.mxu0 %v2972_v6  ;;  %v3025_v6 = vld [vmem:[#allocation3 + $0x48] sm:$0xff]   ;;  %v2733_v38 = vld [vmem:[%s3965_s5 + $0x2] ss:$8 sm:$0x3] }
 0x17f   :  { %2391 = vmatpush1.bf16.msra.mxu1 %v3015_v22 }
 0x180   :  { %2392 = vmatprep.subr.bf16.mxu1 %v3074_v0 }
 0x181   :  { %2247 = vmatpush1.bf16.msra.mxu0 %v2970_v28  ;;  %v2077_v28 = vrot.slane %v2733_v38, %v3796_v41 }
 0x182   :  { %2248 = vmatprep.subr.bf16.mxu0 %v2975_v31  ;;  %v2081_v31 = vrot.slane %v2733_v38, %v3803_v44 }
 0x183   :  { %2393 = vmatpush1.bf16.msra.mxu1 %v3016_v24 }
 0x184   :  { %2394 = vmatprep.subr.bf16.mxu1 %v3074_v0 }
 0x185   :  { %2249 = vmatpush1.bf16.msra.mxu0 %v2973_v45 }
 0x186   :  { %2250 = vmatprep.subr.bf16.mxu0 %v2978_v32 }
 0x187   :  { %2395 = vmatpush1.bf16.msra.mxu1 %v3017_v26 }
 0x188   :  { %2396 = vmatprep.subr.bf16.mxu1 %v3074_v0 }
 0x189   :  { %2251 = vmatpush1.bf16.msra.mxu0 %v2976_v33 }
 0x18a   :  { %2252 = vmatprep.subr.bf16.mxu0 %v2981_v50 }
 0x18b   :  { %2397 = vmatpush1.bf16.msra.mxu1 %v3018_v29 }
 0x18c   :  { %2398 = vmatprep.subr.bf16.mxu1 %v3074_v0 }
 0x18d   :  { %2253 = vmatpush1.bf16.msra.mxu0 %v2979_v51 }
 0x18e   :  { %2254 = vmatprep.subr.bf16.mxu0 %v2984_v55 }
 0x18f   :  { %2399 = vmatpush1.bf16.msra.mxu1 %v3019_v30 }
 0x190   :  { %2400 = vmatprep.subr.bf16.mxu1 %v3074_v0 }
 0x191   :  { %2255 = vmatpush1.bf16.msra.mxu0 %v2982_v58 }
 0x192   :  { %2256 = vmatprep.subr.bf16.mxu0 %v2987_v59 }
 0x193   :  { %2401 = vmatpush1.bf16.msra.mxu1 %v3020_v34 }
 0x194   :  { %2402 = vmatprep.subr.bf16.mxu1 %v3074_v0 }
 0x195   :  { %2257 = vmatpush1.bf16.msra.mxu0 %v2985_v60 }
 0x196   :  { %2258 = vmatprep.subr.bf16.mxu0 %v2990_v3  ;;  %v2313_v3 = vld [vmem:[%s3965_s5 + $0x3] ss:$0 sm:$0xff] }
 0x197   :  { %2403 = vmatpush1.bf16.msra.mxu1 %v3021_v36 }
 0x198   :  { %2404 = vmatprep.subr.bf16.mxu1 %v3074_v0 }
 0x199   :  { %2259 = vmatpush1.bf16.msra.mxu0 %v2988_v4 }
 0x19a   :  { %2260 = vmatprep.subr.bf16.mxu0 %v2993_v7 }
 0x19b   :  { %2405 = vmatpush1.bf16.msra.mxu1 %v3022_v37 }
 0x19c   :  { %2414 = vmatprep.subr.bf16.mxu1 %v3074_v0 }
 0x19d   :  { %2261 = vmatpush2.bf16.msra.mxu0 %v2991_v8 }
 0x19e   :  { %2262 = vmatprep.subr.bf16.mxu0 %v2996_v9 }
 0x19f   :  { %2415 = vmatpush2.bf16.msra.mxu1 %v3023_v39 }
 0x1a0   :  { %2416 = vmatprep.subr.bf16.mxu1 %v3074_v0 }
 0x1a1   :  { %2263 = vmatpush2.bf16.msra.mxu0 %v2994_v10 }
 0x1a2   :  { %2264 = vmatprep.subr.bf16.mxu0 %v2999_v11 }
 0x1a3   :  { %2417 = vmatpush2.bf16.msra.mxu1 %v3024_v40 }
 0x1a4   :  { %2418 = vmatprep.subr.bf16.mxu1 %v3074_v0 }
 0x1a5   :  { %2265 = vmatpush2.bf16.msra.mxu0 %v2997_v12 }
 0x1a6   :  { %2266 = vmatprep.subr.bf16.mxu0 %v3002_v35 }
 0x1a7   :  { %2419 = vmatpush2.bf16.msra.mxu1 %v3025_v6 }
 0x1a8   :  { %2420 = vmatprep.subr.bf16.mxu1 %v3074_v0 }
 0x1a9   :  { %2267 = vmatpush2.bf16.msra.mxu0 %v3000_v13 }
 0x1aa   :  { %2268 = vmatprep.subr.bf16.mxu0 %v3005_v14 }
 0x1ab   :  { %2421 = vmatpush2.bf16.msra.mxu1 %v3026_v54 }
 0x1ad   :  { %2269 = vmatpush2.bf16.msra.mxu0 %v3003_v15 }
 0x1ae   :  { %2270 = vmatprep.subr.bf16.mxu0 %v3008_v16 }
 0x1b1   :  { %2271 = vmatpush2.bf16.msra.mxu0 %v3006_v17 }
 0x1b2   :  { %2272 = vmatprep.subr.bf16.mxu0 %v3011_v18 }
 0x1b5   :  { %2273 = vmatpush2.bf16.msra.mxu0 %v3009_v19 }
 0x1b6   :  { %2274 = vmatprep.subr.bf16.mxu0 %v3014_v20 }
 0x1b9   :  { %2275 = vmatpush2.bf16.msra.mxu0 %v3012_v21 }
 0x23c   :  { %v1987_v48 = vpop.f32.mrf.mxu0 }
 0x23d   :  { %v1988_v49 = vadd.f32 %v1987_v48, %v1626_v46 }
 0x23e   :  { %v1989_v52 = vpop.f32.mrf.mxu0  ;;  %v2028_v53 = vpop.f32.mrf.mxu1 }
 0x23f   :  { %v1990_v56 = vadd.f32 %v1989_v52, %v1630_v47  ;;  %v2029_v57 = vadd.f32 %v2028_v53, %v1988_v49 }
 0x240   :  { %v1991_v61 = vpop.f32.mrf.mxu0  ;;  %v2030_v62 = vpop.f32.mrf.mxu1 }
 0x241   :  { %v2031_v63 = vadd.f32 %v2030_v62, %v1990_v56  ;;  %v2035_v42 = vmax.f32 %v2029_v57, 0.0 }
 0x242   :  { %v1992_v1 = vpop.f32.mrf.mxu0  ;;  %v2032_v2 = vpop.f32.mrf.mxu1 }
 0x243   :  { %v2036_v5 = vmax.f32 %v2031_v63, 0.0  ;;  %v2037_v27 = vpack.c.bf16 %v2035_v42, %v2035_v42 }
 0x244   :  { %v2033_v23 = vpop.f32.mrf.mxu1 }
 0x245   :  { %v2038_v25 = vpack.c.bf16 %v2036_v5, %v2036_v5 }
 0x247   :  { %2276 = vmatprep.mubr.bf16.mxu0 %v2038_v25 }
 0x248   :  { %2277 = vmatmul.mubr.bf16.vlgmr.msra.gmra.mxu0 %v2037_v27 }
 0x308   :  { %v2278_v45 = vpop.f32.mrf.mxu0 }
 0x309   :  { %v2279_v32 = vadd.f32 %v2278_v45, %v2077_v28 }
 0x30a   :  { %v2280_v33 = vpop.f32.mrf.mxu0 }
 0x30b   :  { %v2281_v50 = vadd.f32 %v2280_v33, %v2081_v31  ;;  %v2285_v51 = vmax.f32 %v2279_v32, 0.0 }
 0x30c   :  { %v2282_v55 = vpop.f32.mrf.mxu0 }
 0x30d   :  { %v2286_v58 = vmax.f32 %v2281_v50, 0.0  ;;  %v2287_v60 = vpack.c.bf16 %v2285_v51, %v2285_v51 }
 0x30e   :  { %v2283_v59 = vpop.f32.mrf.mxu0 }
 0x30f   :  { %v2288_v0 = vpack.c.bf16 %v2286_v58, %v2286_v58 }
 0x311   :  { %2778 = vmatprep.mubr.msk.bf16.mxu1 %vm2386_vm3, %v2288_v0 }
 0x312   :  { %2423 = vmatmul.mubr.bf16.vlgmr.msra.gmra.mxu1 %v2287_v60 }
 0x3d2   :  { %v2424_v41 = vpop.f32.mrf.mxu1 }
 0x3d3   :  { %v2425_v44 = vadd.f32 %v2424_v41, %v2313_v3 }
 0x3d4   :  { %v2426_v4 = vpop.f32.mrf.mxu1 }
 0x3d5   :  { %2430 = vst [vmem:[#allocation6] sm:$0x3] %v2425_v44 }
 0x3d6   :  { %v2427_v7 = vpop.f32.mrf.mxu1 }
 0x3d7   :  { %3058 = shalt.err (!%p3055_p9)
}
 0x3d8   :  { %2440 = dma.vmem_to_hbm [thread:$0]  %s2438_s18, 32, %s3966_s6, [#allocation5]   ;;  %v2428_v8 = vpop.f32.mrf.mxu1 }
 0x3d9   :  { %3069 = dma.done.wait [#allocation5], 32  }
 0x3da   :  { %3070 = vsyncadd [#allocation5], 4294967264 }
 0x3db   :  { %2444 = vsyncpa [#allocation4], 1 }
 0x3dc   :  { %2445 = vsyncpa [#allocation5], 1 }

</bundles_post_ra>
